<compile_context>
chip_gen: v7x
topology: tpu7x:2x2x1
jax: 0.10.0
libtpu: 0.0.40
codegen_flags: <defaults>
</compile_context>

<pallas_src>
import functools

import jax
import jax.numpy as jnp
from jax import lax
from jax.experimental import pallas as pl
from jax.experimental.pallas import tpu as pltpu


def _round_up(n, m):
    return ((n + m - 1) // m) * m


def _pad2(a, r, c):
    return jnp.pad(a, ((0, r - a.shape[0]), (0, c - a.shape[1])))


def gru_kernel(x_ref, wi_ref, wh_ref, bg_ref, bhn_ref, wout_ref, bout_ref,
               o_ref, gi_ref, *, seq_len, rows, batch, hidden_p):
    """One grid step = one tile of stacked sequences (rows = S_tile * B)."""
    T, R, Hp = seq_len, rows, hidden_p

    # Hoisted input projection for the whole tile: (T*R, I) @ (I, 3Hp), fused bias folded in.
    gi_ref[...] = (
        jnp.dot(x_ref[0], wi_ref[...], preferred_element_type=jnp.float32)
        + bg_ref[...]
    )

    w_h = wh_ref[...]                                   # (Hp, 3Hp), gate order r|z|n
    b_hn = jnp.broadcast_to(bhn_ref[...], (R, Hp))      # hoisted out of the timestep loop

    def step(t, h):
        row = pl.multiple_of(t * R, R)
        gi = gi_ref[pl.ds(row, R), :]                                   # (R, 3Hp) f32
        gh = jnp.dot(h.astype(w_h.dtype), w_h,
                     preferred_element_type=jnp.float32)                # (R, 3Hp) f32
        r = jax.nn.sigmoid(gi[:, :Hp] + gh[:, :Hp])                     # 128-lane aligned slices
        z = jax.nn.sigmoid(gi[:, Hp:2 * Hp] + gh[:, Hp:2 * Hp])
        n = jnp.tanh(gi[:, 2 * Hp:] + r * (gh[:, 2 * Hp:] + b_hn))
        return (1.0 - z) * n + z * h

    h0 = jnp.zeros((R, Hp), jnp.float32)
    unroll = max(u for u in range(1, min(T, 8) + 1) if T % u == 0)      # bounded unroll
    h = lax.fori_loop(0, T, step, h0, unroll=unroll)

    # last timestep hidden -> per-sequence mean over batch -> output Linear
    s_tile = R // batch
    if batch % 8 == 0:
        m = jnp.mean(h.reshape(s_tile, batch, Hp), axis=1)              # (s_tile, Hp)
    else:
        m = jnp.concatenate(
            [jnp.mean(h[s * batch:(s + 1) * batch], axis=0, keepdims=True)
             for s in range(s_tile)], axis=0)
    o_ref[0] = (jnp.dot(m.astype(wout_ref.dtype), wout_ref[...],
                        preferred_element_type=jnp.float32)
                + bout_ref[...])                                        # (s_tile, Op)


def zgru_batch_forward(x, params, *, compute_dtype=jnp.float32, max_rows_per_tile=512):
    """x: (S, T, B, I) float32.  Returns z: (S, output_size).

    compute_dtype: dtype of matmul operands (set jnp.bfloat16 on v6e/v7x; accumulation
    stays f32 via preferred_element_type).
    """
    S, T, B, I = x.shape
    H = params["whr"].shape[0]
    O = params["wout"].shape[1]
    Hp = _round_up(H, 128)          # lane-align gate boundaries
    Op = _round_up(O, 128)          # lane-dense output store
    H3 = 3 * Hp

    # Pick how many sequences are stacked per grid step (largest divisor of S within budget).
    s_tile = 1
    for cand in range(1, S + 1):
        if S % cand == 0 and cand * B <= max_rows_per_tile:
            s_tile = cand
    nt = S // s_tile
    R = s_tile * B

    # Fused, lane-padded gate weights (PyTorch gate order r, z, n); foldable biases folded.
    w_i = jnp.concatenate([_pad2(params["wir"], I, Hp),
                           _pad2(params["wiz"], I, Hp),
                           _pad2(params["win"], I, Hp)], axis=1)                  # (I, 3Hp)
    w_h = jnp.concatenate([_pad2(params["whr"], Hp, Hp),
                           _pad2(params["whz"], Hp, Hp),
                           _pad2(params["whn"], Hp, Hp)], axis=1)                 # (Hp, 3Hp)
    b_g = jnp.concatenate([_pad2(params["bir"] + params["bhr"], 1, Hp),
                           _pad2(params["biz"] + params["bhz"], 1, Hp),
                           _pad2(params["bin"], 1, Hp)], axis=1)                  # (1, 3Hp)
    b_hn = _pad2(params["bhn"], 1, Hp)                                            # (1, Hp)
    w_out = _pad2(params["wout"], Hp, Op)                                         # (Hp, Op)
    b_out = _pad2(params["bout"], 1, Op)                                          # (1, Op)

    # x: (S, T, B, I) -> (nt, T*R, I), time-major within each tile so that step t reads a
    # contiguous R-row block (row = t*R + s_local*B + b).
    x_k = (x.reshape(nt, s_tile, T, B, I)
             .transpose(0, 2, 1, 3, 4)
             .reshape(nt, T * R, I)).astype(compute_dtype)
    w_i = w_i.astype(compute_dtype)
    w_h = w_h.astype(compute_dtype)
    w_out = w_out.astype(compute_dtype)

    kernel = functools.partial(gru_kernel, seq_len=T, rows=R, batch=B, hidden_p=Hp)

    def const_spec(shape):
        return pl.BlockSpec(shape, lambda i: (0,) * len(shape))

    out = pl.pallas_call(
        kernel,
        out_shape=jax.ShapeDtypeStruct((nt, s_tile, Op), jnp.float32),
        grid_spec=pltpu.PrefetchScalarGridSpec(
            num_scalar_prefetch=0,
            grid=(nt,),
            in_specs=[
                pl.BlockSpec((1, T * R, I), lambda i: (i, 0, 0)),   # x slab per tile
                const_spec((I, H3)),                                # fused W_i
                const_spec((Hp, H3)),                               # fused W_h
                const_spec((1, H3)),                                # fused bias (r|z|n)
                const_spec((1, Hp)),                                # b_hn
                const_spec((Hp, Op)),                               # W_out
                const_spec((1, Op)),                                # b_out
            ],
            out_specs=pl.BlockSpec((1, s_tile, Op), lambda i: (i, 0, 0)),
            scratch_shapes=[pltpu.VMEM((T * R, H3), jnp.float32)],  # hoisted input projection
        ),
        compiler_params=pltpu.CompilerParams(
            dimension_semantics=("parallel",),
            vmem_limit_bytes=48 * 1024 * 1024),
    )(x_k, w_i, w_h, b_g, b_hn, w_out, b_out)

    return out.reshape(S, Op)[:, :O]


def zgru_batch_reference(x, params):
    """Pure-JAX reference matching PyTorch GRU semantics (for validation)."""
    S, T, B, I = x.shape
    H = params["whr"].shape[0]
    outs = []
    for s in range(S):
        h = jnp.zeros((B, H), jnp.float32)
        for t in range(T):
            xt = x[s, t]
            r = jax.nn.sigmoid(xt @ params["wir"] + params["bir"]
                               + h @ params["whr"] + params["bhr"])
            zg = jax.nn.sigmoid(xt @ params["wiz"] + params["biz"]
                                + h @ params["whz"] + params["bhz"])
            n = jnp.tanh(xt @ params["win"] + params["bin"]
                         + r * (h @ params["whn"] + params["bhn"]))
            h = (1.0 - zg) * n + zg * h
        m = h.mean(axis=0, keepdims=True)
        outs.append((m @ params["wout"] + params["bout"]).reshape(-1))
    return jnp.stack(outs)


def make_params(key, input_size, hidden_size, output_size):
    keys = jax.random.split(key, 15)
    f = lambda k, shape: (0.1 * jax.random.normal(k, shape)).astype(jnp.float32)
    I, H, O = input_size, hidden_size, output_size
    return {
        "wir": f(keys[0], (I, H)), "wiz": f(keys[1], (I, H)), "win": f(keys[2], (I, H)),
        "whr": f(keys[3], (H, H)), "whz": f(keys[4], (H, H)), "whn": f(keys[5], (H, H)),
        "bir": f(keys[6], (1, H)), "biz": f(keys[7], (1, H)), "bin": f(keys[8], (1, H)),
        "bhr": f(keys[9], (1, H)), "bhz": f(keys[10], (1, H)), "bhn": f(keys[11], (1, H)),
        "wout": f(keys[12], (H, O)), "bout": f(keys[13], (1, O)),
    }


if __name__ == "__main__":
    S, T, B, I, H, O = 2, 8, 8, 16, 32, 16   # small shapes consistent with the module
    key = jax.random.PRNGKey(0)
    kx, kp = jax.random.split(key)
    x = jax.random.normal(kx, (S, T, B, I), dtype=jnp.float32)
    params = make_params(kp, I, H, O)

    z = zgru_batch_forward(x, params)
    z = jax.block_until_ready(z)

    z_ref = zgru_batch_reference(x, params)
    assert z.shape == (S, O)
    assert jnp.allclose(z, z_ref, atol=1e-4, rtol=1e-4), "mismatch vs reference"
    print("KERNEL_OK")
</pallas_src>

<mosaic_0001>
module attributes {stable_mosaic.version = 11 : i64} {
  func.func @gru_kernel(%arg0: i32, %arg1: memref<1x128x16xf32, #tpu.memory_space<vmem>>, %arg2: memref<16x384xf32, #tpu.memory_space<vmem>>, %arg3: memref<128x384xf32, #tpu.memory_space<vmem>>, %arg4: memref<1x384xf32, #tpu.memory_space<vmem>>, %arg5: memref<1x128xf32, #tpu.memory_space<vmem>>, %arg6: memref<128x128xf32, #tpu.memory_space<vmem>>, %arg7: memref<1x128xf32, #tpu.memory_space<vmem>>, %arg8: memref<1x2x128xf32, #tpu.memory_space<vmem>>, %arg9: memref<128x384xf32, #tpu.memory_space<vmem>>) attributes {dimension_semantics = [#tpu.dimension_semantics<parallel>], iteration_bounds = array<i64: 1>, scalar_prefetch = 0 : i64, scratch_operands = 1 : i64, tpu.core_type = #tpu.core_type<tc>, window_params = [{transform_indices = @transform_0, window_bounds = array<i64: 1, 128, 16>}, {pipeline_mode = #tpu.pipeline_mode<synchronous>, transform_indices = @transform_1, window_bounds = array<i64: 16, 384>}, {pipeline_mode = #tpu.pipeline_mode<synchronous>, transform_indices = @transform_2, window_bounds = array<i64: 128, 384>}, {pipeline_mode = #tpu.pipeline_mode<synchronous>, transform_indices = @transform_3, window_bounds = array<i64: 1, 384>}, {pipeline_mode = #tpu.pipeline_mode<synchronous>, transform_indices = @transform_4, window_bounds = array<i64: 1, 128>}, {pipeline_mode = #tpu.pipeline_mode<synchronous>, transform_indices = @transform_5, window_bounds = array<i64: 128, 128>}, {pipeline_mode = #tpu.pipeline_mode<synchronous>, transform_indices = @transform_6, window_bounds = array<i64: 1, 128>}, {transform_indices = @transform_7, window_bounds = array<i64: 1, 2, 128>}]} {
    %c0 = arith.constant 0 : index
    %c0_0 = arith.constant 0 : index
    %c0_1 = arith.constant 0 : index
    %0 = vector.load %arg1[%c0, %c0_0, %c0_1] : memref<1x128x16xf32, #tpu.memory_space<vmem>>, vector<1x128x16xf32>
    %1 = vector.shape_cast %0 : vector<1x128x16xf32> to vector<128x16xf32>
    %c0_2 = arith.constant 0 : index
    %c0_3 = arith.constant 0 : index
    %2 = vector.load %arg2[%c0_2, %c0_3] : memref<16x384xf32, #tpu.memory_space<vmem>>, vector<16x384xf32>
    %cst = arith.constant dense<0.000000e+00> : vector<128x384xf32>
    %3 = tpu.matmul %1, %2, %cst {dimension_numbers = #tpu.dot_dimension_numbers<[1], [0], [0], [1], [0, 0, 1, 1], [], []>} : vector<128x16xf32>, vector<16x384xf32>, vector<128x384xf32> -> vector<128x384xf32>
    %c0_4 = arith.constant 0 : index
    %c0_5 = arith.constant 0 : index
    %4 = vector.load %arg4[%c0_4, %c0_5] : memref<1x384xf32, #tpu.memory_space<vmem>>, vector<1x384xf32>
    %5 = vector.broadcast %4 : vector<1x384xf32> to vector<128x384xf32>
    %6 = arith.addf %3, %5 : vector<128x384xf32>
    %c0_6 = arith.constant 0 : index
    %c0_7 = arith.constant 0 : index
    %7 = vector.load %arg9[%c0_6, %c0_7] : memref<128x384xf32, #tpu.memory_space<vmem>>, vector<128x384xf32>
    tpu.vector_store %arg9[%c0_6, %c0_7], %6 {strides = array<i32>} : memref<128x384xf32, #tpu.memory_space<vmem>>, vector<128x384xf32>,
    %c0_8 = arith.constant 0 : index
    %c0_9 = arith.constant 0 : index
    %8 = vector.load %arg3[%c0_8, %c0_9] : memref<128x384xf32, #tpu.memory_space<vmem>>, vector<128x384xf32>
    %c0_10 = arith.constant 0 : index
    %c0_11 = arith.constant 0 : index
    %9 = vector.load %arg5[%c0_10, %c0_11] : memref<1x128xf32, #tpu.memory_space<vmem>>, vector<1x128xf32>
    %10 = vector.shape_cast %9 : vector<1x128xf32> to vector<1x128xf32>
    %11 = vector.broadcast %10 : vector<1x128xf32> to vector<16x128xf32>
    %cst_12 = arith.constant 0.000000e+00 : f32
    %12 = vector.broadcast %cst_12 : f32 to vector<16x128xf32>
    %c0_i32 = arith.constant 0 : i32
    %c16_i32 = arith.constant 16 : i32
    %13 = arith.muli %c0_i32, %c16_i32 : i32
    %14 = tpu.assume_multiple %13, 16 : i32
    %15 = arith.index_cast %14 : i32 to index
    %c0_13 = arith.constant 0 : index
    %16 = vector.load %arg9[%15, %c0_13] : memref<128x384xf32, #tpu.memory_space<vmem>>, vector<16x384xf32>
    %cst_14 = arith.constant dense<0.000000e+00> : vector<16x384xf32>
    %17 = tpu.matmul %12, %8, %cst_14 {dimension_numbers = #tpu.dot_dimension_numbers<[1], [0], [0], [1], [0, 0, 1, 1], [], []>} : vector<16x128xf32>, vector<128x384xf32>, vector<16x384xf32> -> vector<16x384xf32>
    %18 = vector.extract_strided_slice %16 {offsets = [0, 0], sizes = [16, 128], strides = [1, 1]} : vector<16x384xf32> to vector<16x128xf32>
    %19 = vector.extract_strided_slice %17 {offsets = [0, 0], sizes = [16, 128], strides = [1, 1]} : vector<16x384xf32> to vector<16x128xf32>
    %20 = arith.addf %18, %19 : vector<16x128xf32>
    %21 = arith.negf %20 : vector<16x128xf32>
    %22 = math.exp %21 : vector<16x128xf32>
    %cst_15 = arith.constant 1.000000e+00 : f32
    %23 = vector.broadcast %cst_15 : f32 to vector<16x128xf32>
    %24 = arith.addf %23, %22 : vector<16x128xf32>
    %25 = arith.divf %23, %24 : vector<16x128xf32>
    %26 = vector.extract_strided_slice %16 {offsets = [0, 128], sizes = [16, 128], strides = [1, 1]} : vector<16x384xf32> to vector<16x128xf32>
    %27 = vector.extract_strided_slice %17 {offsets = [0, 128], sizes = [16, 128], strides = [1, 1]} : vector<16x384xf32> to vector<16x128xf32>
    %28 = arith.addf %26, %27 : vector<16x128xf32>
    %29 = arith.negf %28 : vector<16x128xf32>
    %30 = math.exp %29 : vector<16x128xf32>
    %cst_16 = arith.constant 1.000000e+00 : f32
    %31 = vector.broadcast %cst_16 : f32 to vector<16x128xf32>
    %32 = arith.addf %31, %30 : vector<16x128xf32>
    %33 = arith.divf %31, %32 : vector<16x128xf32>
    %34 = vector.extract_strided_slice %16 {offsets = [0, 256], sizes = [16, 128], strides = [1, 1]} : vector<16x384xf32> to vector<16x128xf32>
    %35 = vector.extract_strided_slice %17 {offsets = [0, 256], sizes = [16, 128], strides = [1, 1]} : vector<16x384xf32> to vector<16x128xf32>
    %36 = arith.addf %35, %11 : vector<16x128xf32>
    %37 = arith.mulf %25, %36 : vector<16x128xf32>
    %38 = arith.addf %34, %37 : vector<16x128xf32>
    %39 = math.tanh %38 : vector<16x128xf32>
    %cst_17 = arith.constant 1.000000e+00 : f32
    %40 = vector.broadcast %cst_17 : f32 to vector<16x128xf32>
    %41 = arith.subf %40, %33 : vector<16x128xf32>
    %42 = arith.mulf %41, %39 : vector<16x128xf32>
    %43 = arith.mulf %33, %12 : vector<16x128xf32>
    %44 = arith.addf %42, %43 : vector<16x128xf32>
    %c1_i32 = arith.constant 1 : i32
    %c16_i32_18 = arith.constant 16 : i32
    %45 = arith.muli %c1_i32, %c16_i32_18 : i32
    %46 = tpu.assume_multiple %45, 16 : i32
    %47 = arith.index_cast %46 : i32 to index
    %c0_19 = arith.constant 0 : index
    %48 = vector.load %arg9[%47, %c0_19] : memref<128x384xf32, #tpu.memory_space<vmem>>, vector<16x384xf32>
    %cst_20 = arith.constant dense<0.000000e+00> : vector<16x384xf32>
    %49 = tpu.matmul %44, %8, %cst_20 {dimension_numbers = #tpu.dot_dimension_numbers<[1], [0], [0], [1], [0, 0, 1, 1], [], []>} : vector<16x128xf32>, vector<128x384xf32>, vector<16x384xf32> -> vector<16x384xf32>
    %50 = vector.extract_strided_slice %48 {offsets = [0, 0], sizes = [16, 128], strides = [1, 1]} : vector<16x384xf32> to vector<16x128xf32>
    %51 = vector.extract_strided_slice %49 {offsets = [0, 0], sizes = [16, 128], strides = [1, 1]} : vector<16x384xf32> to vector<16x128xf32>
    %52 = arith.addf %50, %51 : vector<16x128xf32>
    %53 = arith.negf %52 : vector<16x128xf32>
    %54 = math.exp %53 : vector<16x128xf32>
    %cst_21 = arith.constant 1.000000e+00 : f32
    %55 = vector.broadcast %cst_21 : f32 to vector<16x128xf32>
    %56 = arith.addf %55, %54 : vector<16x128xf32>
    %57 = arith.divf %55, %56 : vector<16x128xf32>
    %58 = vector.extract_strided_slice %48 {offsets = [0, 128], sizes = [16, 128], strides = [1, 1]} : vector<16x384xf32> to vector<16x128xf32>
    %59 = vector.extract_strided_slice %49 {offsets = [0, 128], sizes = [16, 128], strides = [1, 1]} : vector<16x384xf32> to vector<16x128xf32>
    %60 = arith.addf %58, %59 : vector<16x128xf32>
    %61 = arith.negf %60 : vector<16x128xf32>
    %62 = math.exp %61 : vector<16x128xf32>
    %cst_22 = arith.constant 1.000000e+00 : f32
    %63 = vector.broadcast %cst_22 : f32 to vector<16x128xf32>
    %64 = arith.addf %63, %62 : vector<16x128xf32>
    %65 = arith.divf %63, %64 : vector<16x128xf32>
    %66 = vector.extract_strided_slice %48 {offsets = [0, 256], sizes = [16, 128], strides = [1, 1]} : vector<16x384xf32> to vector<16x128xf32>
    %67 = vector.extract_strided_slice %49 {offsets = [0, 256], sizes = [16, 128], strides = [1, 1]} : vector<16x384xf32> to vector<16x128xf32>
    %68 = arith.addf %67, %11 : vector<16x128xf32>
    %69 = arith.mulf %57, %68 : vector<16x128xf32>
    %70 = arith.addf %66, %69 : vector<16x128xf32>
    %71 = math.tanh %70 : vector<16x128xf32>
    %cst_23 = arith.constant 1.000000e+00 : f32
    %72 = vector.broadcast %cst_23 : f32 to vector<16x128xf32>
    %73 = arith.subf %72, %65 : vector<16x128xf32>
    %74 = arith.mulf %73, %71 : vector<16x128xf32>
    %75 = arith.mulf %65, %44 : vector<16x128xf32>
    %76 = arith.addf %74, %75 : vector<16x128xf32>
    %c2_i32 = arith.constant 2 : i32
    %c16_i32_24 = arith.constant 16 : i32
    %77 = arith.muli %c2_i32, %c16_i32_24 : i32
    %78 = tpu.assume_multiple %77, 16 : i32
    %79 = arith.index_cast %78 : i32 to index
    %c0_25 = arith.constant 0 : index
    %80 = vector.load %arg9[%79, %c0_25] : memref<128x384xf32, #tpu.memory_space<vmem>>, vector<16x384xf32>
    %cst_26 = arith.constant dense<0.000000e+00> : vector<16x384xf32>
    %81 = tpu.matmul %76, %8, %cst_26 {dimension_numbers = #tpu.dot_dimension_numbers<[1], [0], [0], [1], [0, 0, 1, 1], [], []>} : vector<16x128xf32>, vector<128x384xf32>, vector<16x384xf32> -> vector<16x384xf32>
    %82 = vector.extract_strided_slice %80 {offsets = [0, 0], sizes = [16, 128], strides = [1, 1]} : vector<16x384xf32> to vector<16x128xf32>
    %83 = vector.extract_strided_slice %81 {offsets = [0, 0], sizes = [16, 128], strides = [1, 1]} : vector<16x384xf32> to vector<16x128xf32>
    %84 = arith.addf %82, %83 : vector<16x128xf32>
    %85 = arith.negf %84 : vector<16x128xf32>
    %86 = math.exp %85 : vector<16x128xf32>
    %cst_27 = arith.constant 1.000000e+00 : f32
    %87 = vector.broadcast %cst_27 : f32 to vector<16x128xf32>
    %88 = arith.addf %87, %86 : vector<16x128xf32>
    %89 = arith.divf %87, %88 : vector<16x128xf32>
    %90 = vector.extract_strided_slice %80 {offsets = [0, 128], sizes = [16, 128], strides = [1, 1]} : vector<16x384xf32> to vector<16x128xf32>
    %91 = vector.extract_strided_slice %81 {offsets = [0, 128], sizes = [16, 128], strides = [1, 1]} : vector<16x384xf32> to vector<16x128xf32>
    %92 = arith.addf %90, %91 : vector<16x128xf32>
    %93 = arith.negf %92 : vector<16x128xf32>
    %94 = math.exp %93 : vector<16x128xf32>
    %cst_28 = arith.constant 1.000000e+00 : f32
    %95 = vector.broadcast %cst_28 : f32 to vector<16x128xf32>
    %96 = arith.addf %95, %94 : vector<16x128xf32>
    %97 = arith.divf %95, %96 : vector<16x128xf32>
    %98 = vector.extract_strided_slice %80 {offsets = [0, 256], sizes = [16, 128], strides = [1, 1]} : vector<16x384xf32> to vector<16x128xf32>
    %99 = vector.extract_strided_slice %81 {offsets = [0, 256], sizes = [16, 128], strides = [1, 1]} : vector<16x384xf32> to vector<16x128xf32>
    %100 = arith.addf %99, %11 : vector<16x128xf32>
    %101 = arith.mulf %89, %100 : vector<16x128xf32>
    %102 = arith.addf %98, %101 : vector<16x128xf32>
    %103 = math.tanh %102 : vector<16x128xf32>
    %cst_29 = arith.constant 1.000000e+00 : f32
    %104 = vector.broadcast %cst_29 : f32 to vector<16x128xf32>
    %105 = arith.subf %104, %97 : vector<16x128xf32>
    %106 = arith.mulf %105, %103 : vector<16x128xf32>
    %107 = arith.mulf %97, %76 : vector<16x128xf32>
    %108 = arith.addf %106, %107 : vector<16x128xf32>
    %c3_i32 = arith.constant 3 : i32
    %c16_i32_30 = arith.constant 16 : i32
    %109 = arith.muli %c3_i32, %c16_i32_30 : i32
    %110 = tpu.assume_multiple %109, 16 : i32
    %111 = arith.index_cast %110 : i32 to index
    %c0_31 = arith.constant 0 : index
    %112 = vector.load %arg9[%111, %c0_31] : memref<128x384xf32, #tpu.memory_space<vmem>>, vector<16x384xf32>
    %cst_32 = arith.constant dense<0.000000e+00> : vector<16x384xf32>
    %113 = tpu.matmul %108, %8, %cst_32 {dimension_numbers = #tpu.dot_dimension_numbers<[1], [0], [0], [1], [0, 0, 1, 1], [], []>} : vector<16x128xf32>, vector<128x384xf32>, vector<16x384xf32> -> vector<16x384xf32>
    %114 = vector.extract_strided_slice %112 {offsets = [0, 0], sizes = [16, 128], strides = [1, 1]} : vector<16x384xf32> to vector<16x128xf32>
    %115 = vector.extract_strided_slice %113 {offsets = [0, 0], sizes = [16, 128], strides = [1, 1]} : vector<16x384xf32> to vector<16x128xf32>
    %116 = arith.addf %114, %115 : vector<16x128xf32>
    %117 = arith.negf %116 : vector<16x128xf32>
    %118 = math.exp %117 : vector<16x128xf32>
    %cst_33 = arith.constant 1.000000e+00 : f32
    %119 = vector.broadcast %cst_33 : f32 to vector<16x128xf32>
    %120 = arith.addf %119, %118 : vector<16x128xf32>
    %121 = arith.divf %119, %120 : vector<16x128xf32>
    %122 = vector.extract_strided_slice %112 {offsets = [0, 128], sizes = [16, 128], strides = [1, 1]} : vector<16x384xf32> to vector<16x128xf32>
    %123 = vector.extract_strided_slice %113 {offsets = [0, 128], sizes = [16, 128], strides = [1, 1]} : vector<16x384xf32> to vector<16x128xf32>
    %124 = arith.addf %122, %123 : vector<16x128xf32>
    %125 = arith.negf %124 : vector<16x128xf32>
    %126 = math.exp %125 : vector<16x128xf32>
    %cst_34 = arith.constant 1.000000e+00 : f32
    %127 = vector.broadcast %cst_34 : f32 to vector<16x128xf32>
    %128 = arith.addf %127, %126 : vector<16x128xf32>
    %129 = arith.divf %127, %128 : vector<16x128xf32>
    %130 = vector.extract_strided_slice %112 {offsets = [0, 256], sizes = [16, 128], strides = [1, 1]} : vector<16x384xf32> to vector<16x128xf32>
    %131 = vector.extract_strided_slice %113 {offsets = [0, 256], sizes = [16, 128], strides = [1, 1]} : vector<16x384xf32> to vector<16x128xf32>
    %132 = arith.addf %131, %11 : vector<16x128xf32>
    %133 = arith.mulf %121, %132 : vector<16x128xf32>
    %134 = arith.addf %130, %133 : vector<16x128xf32>
    %135 = math.tanh %134 : vector<16x128xf32>
    %cst_35 = arith.constant 1.000000e+00 : f32
    %136 = vector.broadcast %cst_35 : f32 to vector<16x128xf32>
    %137 = arith.subf %136, %129 : vector<16x128xf32>
    %138 = arith.mulf %137, %135 : vector<16x128xf32>
    %139 = arith.mulf %129, %108 : vector<16x128xf32>
    %140 = arith.addf %138, %139 : vector<16x128xf32>
    %c4_i32 = arith.constant 4 : i32
    %c16_i32_36 = arith.constant 16 : i32
    %141 = arith.muli %c4_i32, %c16_i32_36 : i32
    %142 = tpu.assume_multiple %141, 16 : i32
    %143 = arith.index_cast %142 : i32 to index
    %c0_37 = arith.constant 0 : index
    %144 = vector.load %arg9[%143, %c0_37] : memref<128x384xf32, #tpu.memory_space<vmem>>, vector<16x384xf32>
    %cst_38 = arith.constant dense<0.000000e+00> : vector<16x384xf32>
    %145 = tpu.matmul %140, %8, %cst_38 {dimension_numbers = #tpu.dot_dimension_numbers<[1], [0], [0], [1], [0, 0, 1, 1], [], []>} : vector<16x128xf32>, vector<128x384xf32>, vector<16x384xf32> -> vector<16x384xf32>
    %146 = vector.extract_strided_slice %144 {offsets = [0, 0], sizes = [16, 128], strides = [1, 1]} : vector<16x384xf32> to vector<16x128xf32>
    %147 = vector.extract_strided_slice %145 {offsets = [0, 0], sizes = [16, 128], strides = [1, 1]} : vector<16x384xf32> to vector<16x128xf32>
    %148 = arith.addf %146, %147 : vector<16x128xf32>
    %149 = arith.negf %148 : vector<16x128xf32>
    %150 = math.exp %149 : vector<16x128xf32>
    %cst_39 = arith.constant 1.000000e+00 : f32
    %151 = vector.broadcast %cst_39 : f32 to vector<16x128xf32>
    %152 = arith.addf %151, %150 : vector<16x128xf32>
    %153 = arith.divf %151, %152 : vector<16x128xf32>
    %154 = vector.extract_strided_slice %144 {offsets = [0, 128], sizes = [16, 128], strides = [1, 1]} : vector<16x384xf32> to vector<16x128xf32>
    %155 = vector.extract_strided_slice %145 {offsets = [0, 128], sizes = [16, 128], strides = [1, 1]} : vector<16x384xf32> to vector<16x128xf32>
    %156 = arith.addf %154, %155 : vector<16x128xf32>
    %157 = arith.negf %156 : vector<16x128xf32>
    %158 = math.exp %157 : vector<16x128xf32>
    %cst_40 = arith.constant 1.000000e+00 : f32
    %159 = vector.broadcast %cst_40 : f32 to vector<16x128xf32>
    %160 = arith.addf %159, %158 : vector<16x128xf32>
    %161 = arith.divf %159, %160 : vector<16x128xf32>
    %162 = vector.extract_strided_slice %144 {offsets = [0, 256], sizes = [16, 128], strides = [1, 1]} : vector<16x384xf32> to vector<16x128xf32>
    %163 = vector.extract_strided_slice %145 {offsets = [0, 256], sizes = [16, 128], strides = [1, 1]} : vector<16x384xf32> to vector<16x128xf32>
    %164 = arith.addf %163, %11 : vector<16x128xf32>
    %165 = arith.mulf %153, %164 : vector<16x128xf32>
    %166 = arith.addf %162, %165 : vector<16x128xf32>
    %167 = math.tanh %166 : vector<16x128xf32>
    %cst_41 = arith.constant 1.000000e+00 : f32
    %168 = vector.broadcast %cst_41 : f32 to vector<16x128xf32>
    %169 = arith.subf %168, %161 : vector<16x128xf32>
    %170 = arith.mulf %169, %167 : vector<16x128xf32>
    %171 = arith.mulf %161, %140 : vector<16x128xf32>
    %172 = arith.addf %170, %171 : vector<16x128xf32>
    %c5_i32 = arith.constant 5 : i32
    %c16_i32_42 = arith.constant 16 : i32
    %173 = arith.muli %c5_i32, %c16_i32_42 : i32
    %174 = tpu.assume_multiple %173, 16 : i32
    %175 = arith.index_cast %174 : i32 to index
    %c0_43 = arith.constant 0 : index
    %176 = vector.load %arg9[%175, %c0_43] : memref<128x384xf32, #tpu.memory_space<vmem>>, vector<16x384xf32>
    %cst_44 = arith.constant dense<0.000000e+00> : vector<16x384xf32>
    %177 = tpu.matmul %172, %8, %cst_44 {dimension_numbers = #tpu.dot_dimension_numbers<[1], [0], [0], [1], [0, 0, 1, 1], [], []>} : vector<16x128xf32>, vector<128x384xf32>, vector<16x384xf32> -> vector<16x384xf32>
    %178 = vector.extract_strided_slice %176 {offsets = [0, 0], sizes = [16, 128], strides = [1, 1]} : vector<16x384xf32> to vector<16x128xf32>
    %179 = vector.extract_strided_slice %177 {offsets = [0, 0], sizes = [16, 128], strides = [1, 1]} : vector<16x384xf32> to vector<16x128xf32>
    %180 = arith.addf %178, %179 : vector<16x128xf32>
    %181 = arith.negf %180 : vector<16x128xf32>
    %182 = math.exp %181 : vector<16x128xf32>
    %cst_45 = arith.constant 1.000000e+00 : f32
    %183 = vector.broadcast %cst_45 : f32 to vector<16x128xf32>
    %184 = arith.addf %183, %182 : vector<16x128xf32>
    %185 = arith.divf %183, %184 : vector<16x128xf32>
    %186 = vector.extract_strided_slice %176 {offsets = [0, 128], sizes = [16, 128], strides = [1, 1]} : vector<16x384xf32> to vector<16x128xf32>
    %187 = vector.extract_strided_slice %177 {offsets = [0, 128], sizes = [16, 128], strides = [1, 1]} : vector<16x384xf32> to vector<16x128xf32>
    %188 = arith.addf %186, %187 : vector<16x128xf32>
    %189 = arith.negf %188 : vector<16x128xf32>
    %190 = math.exp %189 : vector<16x128xf32>
    %cst_46 = arith.constant 1.000000e+00 : f32
    %191 = vector.broadcast %cst_46 : f32 to vector<16x128xf32>
    %192 = arith.addf %191, %190 : vector<16x128xf32>
    %193 = arith.divf %191, %192 : vector<16x128xf32>
    %194 = vector.extract_strided_slice %176 {offsets = [0, 256], sizes = [16, 128], strides = [1, 1]} : vector<16x384xf32> to vector<16x128xf32>
    %195 = vector.extract_strided_slice %177 {offsets = [0, 256], sizes = [16, 128], strides = [1, 1]} : vector<16x384xf32> to vector<16x128xf32>
    %196 = arith.addf %195, %11 : vector<16x128xf32>
    %197 = arith.mulf %185, %196 : vector<16x128xf32>
    %198 = arith.addf %194, %197 : vector<16x128xf32>
    %199 = math.tanh %198 : vector<16x128xf32>
    %cst_47 = arith.constant 1.000000e+00 : f32
    %200 = vector.broadcast %cst_47 : f32 to vector<16x128xf32>
    %201 = arith.subf %200, %193 : vector<16x128xf32>
    %202 = arith.mulf %201, %199 : vector<16x128xf32>
    %203 = arith.mulf %193, %172 : vector<16x128xf32>
    %204 = arith.addf %202, %203 : vector<16x128xf32>
    %c6_i32 = arith.constant 6 : i32
    %c16_i32_48 = arith.constant 16 : i32
    %205 = arith.muli %c6_i32, %c16_i32_48 : i32
    %206 = tpu.assume_multiple %205, 16 : i32
    %207 = arith.index_cast %206 : i32 to index
    %c0_49 = arith.constant 0 : index
    %208 = vector.load %arg9[%207, %c0_49] : memref<128x384xf32, #tpu.memory_space<vmem>>, vector<16x384xf32>
    %cst_50 = arith.constant dense<0.000000e+00> : vector<16x384xf32>
    %209 = tpu.matmul %204, %8, %cst_50 {dimension_numbers = #tpu.dot_dimension_numbers<[1], [0], [0], [1], [0, 0, 1, 1], [], []>} : vector<16x128xf32>, vector<128x384xf32>, vector<16x384xf32> -> vector<16x384xf32>
    %210 = vector.extract_strided_slice %208 {offsets = [0, 0], sizes = [16, 128], strides = [1, 1]} : vector<16x384xf32> to vector<16x128xf32>
    %211 = vector.extract_strided_slice %209 {offsets = [0, 0], sizes = [16, 128], strides = [1, 1]} : vector<16x384xf32> to vector<16x128xf32>
    %212 = arith.addf %210, %211 : vector<16x128xf32>
    %213 = arith.negf %212 : vector<16x128xf32>
    %214 = math.exp %213 : vector<16x128xf32>
    %cst_51 = arith.constant 1.000000e+00 : f32
    %215 = vector.broadcast %cst_51 : f32 to vector<16x128xf32>
    %216 = arith.addf %215, %214 : vector<16x128xf32>
    %217 = arith.divf %215, %216 : vector<16x128xf32>
    %218 = vector.extract_strided_slice %208 {offsets = [0, 128], sizes = [16, 128], strides = [1, 1]} : vector<16x384xf32> to vector<16x128xf32>
    %219 = vector.extract_strided_slice %209 {offsets = [0, 128], sizes = [16, 128], strides = [1, 1]} : vector<16x384xf32> to vector<16x128xf32>
    %220 = arith.addf %218, %219 : vector<16x128xf32>
    %221 = arith.negf %220 : vector<16x128xf32>
    %222 = math.exp %221 : vector<16x128xf32>
    %cst_52 = arith.constant 1.000000e+00 : f32
    %223 = vector.broadcast %cst_52 : f32 to vector<16x128xf32>
    %224 = arith.addf %223, %222 : vector<16x128xf32>
    %225 = arith.divf %223, %224 : vector<16x128xf32>
    %226 = vector.extract_strided_slice %208 {offsets = [0, 256], sizes = [16, 128], strides = [1, 1]} : vector<16x384xf32> to vector<16x128xf32>
    %227 = vector.extract_strided_slice %209 {offsets = [0, 256], sizes = [16, 128], strides = [1, 1]} : vector<16x384xf32> to vector<16x128xf32>
    %228 = arith.addf %227, %11 : vector<16x128xf32>
    %229 = arith.mulf %217, %228 : vector<16x128xf32>
    %230 = arith.addf %226, %229 : vector<16x128xf32>
    %231 = math.tanh %230 : vector<16x128xf32>
    %cst_53 = arith.constant 1.000000e+00 : f32
    %232 = vector.broadcast %cst_53 : f32 to vector<16x128xf32>
    %233 = arith.subf %232, %225 : vector<16x128xf32>
    %234 = arith.mulf %233, %231 : vector<16x128xf32>
    %235 = arith.mulf %225, %204 : vector<16x128xf32>
    %236 = arith.addf %234, %235 : vector<16x128xf32>
    %c7_i32 = arith.constant 7 : i32
    %c16_i32_54 = arith.constant 16 : i32
    %237 = arith.muli %c7_i32, %c16_i32_54 : i32
    %238 = tpu.assume_multiple %237, 16 : i32
    %239 = arith.index_cast %238 : i32 to index
    %c0_55 = arith.constant 0 : index
    %240 = vector.load %arg9[%239, %c0_55] : memref<128x384xf32, #tpu.memory_space<vmem>>, vector<16x384xf32>
    %cst_56 = arith.constant dense<0.000000e+00> : vector<16x384xf32>
    %241 = tpu.matmul %236, %8, %cst_56 {dimension_numbers = #tpu.dot_dimension_numbers<[1], [0], [0], [1], [0, 0, 1, 1], [], []>} : vector<16x128xf32>, vector<128x384xf32>, vector<16x384xf32> -> vector<16x384xf32>
    %242 = vector.extract_strided_slice %240 {offsets = [0, 0], sizes = [16, 128], strides = [1, 1]} : vector<16x384xf32> to vector<16x128xf32>
    %243 = vector.extract_strided_slice %241 {offsets = [0, 0], sizes = [16, 128], strides = [1, 1]} : vector<16x384xf32> to vector<16x128xf32>
    %244 = arith.addf %242, %243 : vector<16x128xf32>
    %245 = arith.negf %244 : vector<16x128xf32>
    %246 = math.exp %245 : vector<16x128xf32>
    %cst_57 = arith.constant 1.000000e+00 : f32
    %247 = vector.broadcast %cst_57 : f32 to vector<16x128xf32>
    %248 = arith.addf %247, %246 : vector<16x128xf32>
    %249 = arith.divf %247, %248 : vector<16x128xf32>
    %250 = vector.extract_strided_slice %240 {offsets = [0, 128], sizes = [16, 128], strides = [1, 1]} : vector<16x384xf32> to vector<16x128xf32>
    %251 = vector.extract_strided_slice %241 {offsets = [0, 128], sizes = [16, 128], strides = [1, 1]} : vector<16x384xf32> to vector<16x128xf32>
    %252 = arith.addf %250, %251 : vector<16x128xf32>
    %253 = arith.negf %252 : vector<16x128xf32>
    %254 = math.exp %253 : vector<16x128xf32>
    %cst_58 = arith.constant 1.000000e+00 : f32
    %255 = vector.broadcast %cst_58 : f32 to vector<16x128xf32>
    %256 = arith.addf %255, %254 : vector<16x128xf32>
    %257 = arith.divf %255, %256 : vector<16x128xf32>
    %258 = vector.extract_strided_slice %240 {offsets = [0, 256], sizes = [16, 128], strides = [1, 1]} : vector<16x384xf32> to vector<16x128xf32>
    %259 = vector.extract_strided_slice %241 {offsets = [0, 256], sizes = [16, 128], strides = [1, 1]} : vector<16x384xf32> to vector<16x128xf32>
    %260 = arith.addf %259, %11 : vector<16x128xf32>
    %261 = arith.mulf %249, %260 : vector<16x128xf32>
    %262 = arith.addf %258, %261 : vector<16x128xf32>
    %263 = math.tanh %262 : vector<16x128xf32>
    %cst_59 = arith.constant 1.000000e+00 : f32
    %264 = vector.broadcast %cst_59 : f32 to vector<16x128xf32>
    %265 = arith.subf %264, %257 : vector<16x128xf32>
    %266 = arith.mulf %265, %263 : vector<16x128xf32>
    %267 = arith.mulf %257, %236 : vector<16x128xf32>
    %268 = arith.addf %266, %267 : vector<16x128xf32>
    %c8_i32 = arith.constant 8 : i32
    %269 = vector.shape_cast %268 : vector<16x128xf32> to vector<2x8x128xf32>
    %cst_60 = arith.constant dense<0.000000e+00> : vector<2x128xf32>
    %270 = vector.multi_reduction <add>, %269, %cst_60 [1] : vector<2x8x128xf32> to vector<2x128xf32>
    %cst_61 = arith.constant 8.000000e+00 : f32
    %271 = vector.broadcast %cst_61 : f32 to vector<2x128xf32>
    %272 = arith.divf %270, %271 : vector<2x128xf32>
    %c0_62 = arith.constant 0 : index
    %c0_63 = arith.constant 0 : index
    %273 = vector.load %arg6[%c0_62, %c0_63] : memref<128x128xf32, #tpu.memory_space<vmem>>, vector<128x128xf32>
    %cst_64 = arith.constant dense<0.000000e+00> : vector<2x128xf32>
    %274 = tpu.matmul %272, %273, %cst_64 {dimension_numbers = #tpu.dot_dimension_numbers<[1], [0], [0], [1], [0, 0, 1, 1], [], []>} : vector<2x128xf32>, vector<128x128xf32>, vector<2x128xf32> -> vector<2x128xf32>
    %c0_65 = arith.constant 0 : index
    %c0_66 = arith.constant 0 : index
    %275 = vector.load %arg7[%c0_65, %c0_66] : memref<1x128xf32, #tpu.memory_space<vmem>>, vector<1x128xf32>
    %276 = vector.broadcast %275 : vector<1x128xf32> to vector<2x128xf32>
    %277 = arith.addf %274, %276 : vector<2x128xf32>
    %c0_67 = arith.constant 0 : index
    %c0_68 = arith.constant 0 : index
    %c0_69 = arith.constant 0 : index
    %278 = vector.load %arg8[%c0_67, %c0_68, %c0_69] : memref<1x2x128xf32, #tpu.memory_space<vmem>>, vector<1x2x128xf32>
    %279 = vector.shape_cast %278 : vector<1x2x128xf32> to vector<2x128xf32>
    %280 = vector.shape_cast %277 : vector<2x128xf32> to vector<1x2x128xf32>
    tpu.vector_store %arg8[%c0_67, %c0_68, %c0_69], %280 {strides = array<i32>} : memref<1x2x128xf32, #tpu.memory_space<vmem>>, vector<1x2x128xf32>,
    return
  }
  func.func @transform_0(%arg0: i32) -> (i32, i32, i32) {
    %c0_i32 = arith.constant 0 : i32
    %c0_i32_0 = arith.constant 0 : i32
    %c0_i32_1 = arith.constant 0 : i32
    return %arg0, %c0_i32, %c0_i32_0 : i32, i32, i32
  }
  func.func @transform_1(%arg0: i32) -> (i32, i32) {
    %c0_i32 = arith.constant 0 : i32
    %c0_i32_0 = arith.constant 0 : i32
    %c0_i32_1 = arith.constant 0 : i32
    return %c0_i32, %c0_i32_0 : i32, i32
  }
  func.func @transform_2(%arg0: i32) -> (i32, i32) {
    %c0_i32 = arith.constant 0 : i32
    %c0_i32_0 = arith.constant 0 : i32
    %c0_i32_1 = arith.constant 0 : i32
    return %c0_i32, %c0_i32_0 : i32, i32
  }
  func.func @transform_3(%arg0: i32) -> (i32, i32) {
    %c0_i32 = arith.constant 0 : i32
    %c0_i32_0 = arith.constant 0 : i32
    %c0_i32_1 = arith.constant 0 : i32
    return %c0_i32, %c0_i32_0 : i32, i32
  }
  func.func @transform_4(%arg0: i32) -> (i32, i32) {
    %c0_i32 = arith.constant 0 : i32
    %c0_i32_0 = arith.constant 0 : i32
    %c0_i32_1 = arith.constant 0 : i32
    return %c0_i32, %c0_i32_0 : i32, i32
  }
  func.func @transform_5(%arg0: i32) -> (i32, i32) {
    %c0_i32 = arith.constant 0 : i32
    %c0_i32_0 = arith.constant 0 : i32
    %c0_i32_1 = arith.constant 0 : i32
    return %c0_i32, %c0_i32_0 : i32, i32
  }
  func.func @transform_6(%arg0: i32) -> (i32, i32) {
    %c0_i32 = arith.constant 0 : i32
    %c0_i32_0 = arith.constant 0 : i32
    %c0_i32_1 = arith.constant 0 : i32
    return %c0_i32, %c0_i32_0 : i32, i32
  }
  func.func @transform_7(%arg0: i32) -> (i32, i32, i32) {
    %c0_i32 = arith.constant 0 : i32
    %c0_i32_0 = arith.constant 0 : i32
    %c0_i32_1 = arith.constant 0 : i32
    return %arg0, %c0_i32, %c0_i32_0 : i32, i32, i32
  }
}

</mosaic_0001>

<bundles_post_ra>
// kernel: tpu_custom_call.1
= control target key start
LH: loop header
LB: loop body
LE: loop exit
PB: predicated region body
PF: predicated region fallthrough
CT: control target
= control target key end

     0   :  { %12 = vsyncpa [#allocation4], 0  ;;  %s4523_s0 = inlined_call_operand.vmem [shape: f32[1,128,16], index: 0, kind: input, shape index: {}]   ;;  %s4524_s1 = inlined_call_operand.hbm [shape: f32[16,384], index: 1, kind: input, shape index: {}]   ;;  %s4525_s2 = inlined_call_operand.hbm [shape: f32[128,384], index: 2, kind: input, shape index: {}]   ;;  %s4526_s3 = inlined_call_operand.vmem [shape: f32[1,384], index: 3, kind: input, shape index: {}]   ;;  %s4527_s4 = inlined_call_operand.vmem [shape: f32[1,128], index: 4, kind: input, shape index: {}]   ;;  %s4528_s5 = inlined_call_operand.vmem [shape: f32[128,128], index: 5, kind: input, shape index: {}]   ;;  %s4529_s6 = inlined_call_operand.vmem [shape: f32[1,128], index: 6, kind: input, shape index: {}]   ;;  %s4530_s7 = inlined_call_operand.hbm [shape: f32[1,2,128], index: 7, kind: output, shape index: {}]  }
   0x1   :  { %13 = vsyncpa [#allocation7], 0 }
   0x2   :  { %14 = vsyncpa [#allocation5], 0  ;;  %s3766_s24 = smov [#allocation3]   ;;  %s3694_s28 = scalar_lea.hbm %s4524_s1, 768 }
   0x3   :  { %s22_s25 = sshll.u32 %s3766_s24, 4  ;;  %p3695_p0 = scmp.ne.s32.totalorder %s4524_s1, %s3694_s28  ;;  %s23_s25 = int_to_ptr.vmem [resolvable:$true] %s22_s25 }
   0x4   :  { %p3698_p1 = scmp.lt.u32.totalorder %s3694_s28, %s4524_s1 }
   0x6   :  { %p3700_p2 = pnand %p3698_p1, %p3695_p0 }
   0x8   :  { %3703 = shalt.err (!%p3700_p2)
}
   0x9   :  { %s3704_s10 = scalar_lea.vmem %s23_s25, 768  ;;  %p3709_p4 = scmp.lt.s32.totalorder %s23_s25, %s23_s25 }
   0xa   :  { %p3705_p3 = scmp.ne.s32.totalorder %s23_s25, %s3704_s10  ;;  %p3710_p5 = scmp.lt.s32.totalorder %s3704_s10, %s3704_s10 }
   0xc   :  { %p3711_p6 = por %p3710_p5, %p3709_p4 }
   0xe   :  { %p3712_p7 = pnand %p3711_p6, %p3705_p3 }
  0x10   :  { %3715 = shalt.err (!%p3712_p7)
}
  0x11   :  { %s3767_s11 = smov 384   ;;  %s3768_s12 = smov 24  }
  0x12   :  { %28 = dma.hbm_to_vmem [thread:$0]  %s4524_s1, 768, %s23_s25, [#allocation4], %s3767_s11, %s3767_s11, %s3768_s12  }
  0x13   :  { %s3769_s15 = smov [#allocation6]   ;;  %s3716_s19 = scalar_lea.hbm %s4525_s2, 6144 }
  0x14   :  { %s34_s16 = sshll.u32 %s3769_s15, 4  ;;  %p3717_p8 = scmp.ne.s32.totalorder %s4525_s2, %s3716_s19  ;;  %s35_s16 = int_to_ptr.vmem [resolvable:$true] %s34_s16 }
  0x15   :  { %p3720_p9 = scmp.lt.u32.totalorder %s3716_s19, %s4525_s2 }
  0x17   :  { %p3722_p10 = pnand %p3720_p9, %p3717_p8 }
  0x19   :  { %3725 = shalt.err (!%p3722_p10)
}
  0x1a   :  { %s3726_s24 = scalar_lea.vmem %s35_s16, 6144  ;;  %p3731_p12 = scmp.lt.s32.totalorder %s35_s16, %s35_s16 }
  0x1b   :  { %p3727_p11 = scmp.ne.s32.totalorder %s35_s16, %s3726_s24  ;;  %p3732_p13 = scmp.lt.s32.totalorder %s3726_s24, %s3726_s24 }
  0x1d   :  { %p3733_p0 = por %p3732_p13, %p3731_p12 }
  0x1f   :  { %p3734_p1 = pnand %p3733_p0, %p3727_p11 }
  0x21   :  { %3737 = shalt.err (!%p3734_p1)
}
  0x22   :  { %40 = dma.hbm_to_vmem [thread:$0]  %s4525_s2, 6144, %s35_s16, [#allocation7], %s3767_s11, %s3767_s11, %s3768_s12  }
  0x23   :  { %3760 = dma.done.wait [#allocation4], 768  }
  0x24   :  { %3761 = vsyncadd [#allocation4], 4294966528 }
  0x25   :  { %3762 = dma.done.wait [#allocation7], 6144  }
  0x26   :  { %3763 = vsyncadd [#allocation7], 4294961152  ;;  %v3770_v0 = vmov 0.0   ;;  %v72_v1 = vld [vmem:[#allocation3 + $0x8] sm:$0xff]  ;;  %v75_v2 = vld [vmem:[#allocation3 + $0x20] sm:$0xff]  ;;  %vm94_vm0 = vcmask 130048  }
  0x27   :  { %207 = vmatprep.mubr.f32.mxu0 %v3770_v0  ;;  %v71_v3 = vld [vmem:[#allocation3] sm:$0xff]  ;;  %v2917_v4 = vpack.c.bf16 %v75_v2, %v72_v1  ;;  %v74_v5 = vld [vmem:[#allocation3 + $0x18] sm:$0xff]  ;;  %v501_v9 = vld [vmem:[#allocation6 + $0x20] sm:$0xff]  ;;  %vm3772_vm1 = vmmov 0   ;;  %vm2232_vm2 = vcmask 1041409   ;;  %s3773_s17 = smov [#allocation8]  }
  0x28   :  { %v55_v6 = vld [vmem:[%s4523_s0] sm:$0xff]  ;;  %v498_v7 = vld [vmem:[#allocation6 + $0x8] sm:$0xff]  ;;  %v2919_v8 = vpack.c.bf16 %v74_v5, %v71_v3  ;;  %v497_v10 = vld [vmem:[#allocation6] sm:$0xff]  ;;  %s2312_s18 = sshll.u32 %s3773_s17, 4  ;;  %s2313_s18 = int_to_ptr.vmem [resolvable:$true] %s2312_s18 }
  0x29   :  { %v500_v11 = vld [vmem:[#allocation6 + $0x18] sm:$0xff]  ;;  %2578 = vmatprep.mubr.msk.f32.mxu1 %vm94_vm0, %v55_v6  ;;  %2918 = vmatprep.subr.bf16.mxu0 %v2917_v4  ;;  %v3843_v12 = vpack.c.bf16 %v501_v9, %v498_v7  ;;  %v507_v15 = vld [vmem:[#allocation6 + $0x50] sm:$0xff]  ;;  %v506_v18 = vld [vmem:[#allocation6 + $0x48] sm:$0xff]  ;;  %s3738_s19 = scalar_lea.vmem %s2313_s18, 32  ;;  %p3743_p3 = scmp.lt.s32.totalorder %s2313_s18, %s2313_s18 }
  0x2a   :  { %v504_v13 = vld [vmem:[#allocation6 + $0x38] sm:$0xff]  ;;  %2920 = vmatpush1.bf16.msra.mxu0 %v2919_v8  ;;  %v3845_v14 = vpack.c.bf16 %v500_v11, %v497_v10  ;;  %v503_v17 = vld [vmem:[#allocation6 + $0x30] sm:$0xff]  ;;  %v510_v19 = vld [vmem:[#allocation6 + $0x68] sm:$0xff]  ;;  %p3739_p2 = scmp.ne.s32.totalorder %s2313_s18, %s3738_s19  ;;  %p3744_p4 = scmp.lt.s32.totalorder %s3738_s19, %s3738_s19 }
  0x2b   :  { %2926 = vmatprep.subr.bf16.mxu0 %v3843_v12  ;;  %v3848_v16 = vpack.c.bf16 %v507_v15, %v504_v13  ;;  %v513_v20 = vld [vmem:[#allocation6 + $0x80] sm:$0xff]  ;;  %v56_v21 = vld [vmem:[%s4523_s0 + $0x8] sm:$0xff]  ;;  %v3856_v22 = vpack.c.bf16 %v506_v18, %v503_v17  ;;  %v519_v27 = vld [vmem:[#allocation6 + $0xb0] sm:$0xff] }
  0x2c   :  { %v3859_v23 = vpack.c.bf16 %v513_v20, %v510_v19  ;;  %v509_v24 = vld [vmem:[#allocation6 + $0x60] sm:$0xff]  ;;  %v512_v25 = vld [vmem:[#allocation6 + $0x78] sm:$0xff]  ;;  %v515_v31 = vld [vmem:[#allocation6 + $0x90] sm:$0xff]  ;;  %p3745_p5 = por %p3744_p4, %p3743_p3 }
  0x2d   :  { %2329 = vmatmul.mubr.msk.f32.vlgmr.msra.gmra.mrb[0].mxu0 %vm94_vm0, %v55_v6  ;;  %v516_v26 = vld [vmem:[#allocation6 + $0x98] sm:$0xff]  ;;  %v57_v28 = vld [vmem:[%s4523_s0 + $0x10] sm:$0xff]  ;;  %v3867_v29 = vpack.c.bf16 %v512_v25, %v509_v24  ;;  %v518_v32 = vld [vmem:[#allocation6 + $0xa8] sm:$0xff] }
  0x2e   :  { %2928 = vmatpush1.bf16.msra.mxu0 %v3845_v14  ;;  %213 = vmatprep.mubr.f32.mxu0 %v3770_v0  ;;  %v3870_v30 = vpack.c.bf16 %v519_v27, %v516_v26  ;;  %v522_v33 = vld [vmem:[#allocation6 + $0xc8] sm:$0xff]  ;;  %v525_v34 = vld [vmem:[#allocation6 + $0xe0] sm:$0xff]  ;;  %v76_v36 = vld [vmem:[#allocation3 + $0x28] sm:$0xff]  ;;  %v3878_v38 = vpack.c.bf16 %v518_v32, %v515_v31  ;;  %p3746_p6 = pnand %p3745_p5, %p3739_p2 }
  0x2f   :  { %2930 = vmatprep.subr.bf16.mxu0 %v3848_v16  ;;  %v73_v35 = vld [vmem:[#allocation3 + $0x10] sm:$0xff]  ;;  %v58_v37 = vld [vmem:[%s4523_s0 + $0x18] sm:$0xff]  ;;  %v3881_v40 = vpack.c.bf16 %v525_v34, %v522_v33  ;;  %v524_v42 = vld [vmem:[#allocation6 + $0xd8] sm:$0xff] }
  0x30   :  { %v2921_v39 = vpack.c.bf16 %v76_v36, %v73_v35  ;;  %v521_v41 = vld [vmem:[#allocation6 + $0xc0] sm:$0xff]  ;;  %v499_v43 = vld [vmem:[#allocation6 + $0x10] sm:$0xff]  ;;  %v528_v44 = vld [vmem:[#allocation6 + $0xf8] sm:$0xff] }
  0x31   :  { %2330 = vmatmul.mubr.msk.f32.gmra.mrb[2].mxu0 %vm94_vm0, %v56_v21  ;;  %v531_v45 = vld [vmem:[#allocation6 + $0x110] sm:$0xff]  ;;  %v502_v46 = vld [vmem:[#allocation6 + $0x28] sm:$0xff]  ;;  %v505_v48 = vld [vmem:[#allocation6 + $0x40] sm:$0xff]  ;;  %v3891_v51 = vpack.c.bf16 %v524_v42, %v521_v41 }
  0x32   :  { %219 = vmatprep.mubr.f32.mxu0 %v3770_v0  ;;  %2932 = vmatpush1.bf16.msra.mxu0 %v3856_v22  ;;  %v3884_v47 = vpack.c.bf16 %v502_v46, %v499_v43  ;;  %v508_v49 = vld [vmem:[#allocation6 + $0x58] sm:$0xff]  ;;  %v59_v50 = vld [vmem:[%s4523_s0 + $0x20] sm:$0xff]  ;;  %v3894_v52 = vpack.c.bf16 %v531_v45, %v528_v44  ;;  %v530_v54 = vld [vmem:[#allocation6 + $0x108] sm:$0xff]  ;;  %v79_v44 = vlaneseq }
  0x33   :  { %2934 = vmatprep.subr.bf16.mxu0 %v3859_v23  ;;  %2922 = vmatprep.subr.bf16.mxu1 %v2921_v39  ;;  %v527_v53 = vld [vmem:[#allocation6 + $0xf0] sm:$0xff]  ;;  %v534_v55 = vld [vmem:[#allocation6 + $0x128] sm:$0xff]  ;;  %v537_v56 = vld [vmem:[#allocation6 + $0x140] sm:$0xff]  ;;  %v3898_v57 = vpack.c.bf16 %v508_v49, %v505_v48 }
  0x34   :  { %2924 = vmatpush3.bf16.msra.mxu1 %v2921_v39  ;;  %v511_v58 = vld [vmem:[#allocation6 + $0x70] sm:$0xff]  ;;  %v514_v59 = vld [vmem:[#allocation6 + $0x88] sm:$0xff]  ;;  %v60_v60 = vld [vmem:[%s4523_s0 + $0x28] sm:$0xff]  ;;  %v3907_v61 = vpack.c.bf16 %v530_v54, %v527_v53  ;;  %v3910_v62 = vpack.c.bf16 %v537_v56, %v534_v55  ;;  %v80_v45 = vshrl.u32 %v79_v44, 7 }
  0x35   :  { %2331 = vmatmul.mubr.msk.f32.gmra.mrb[4].mxu0 %vm94_vm0, %v57_v28  ;;  %2958 = vmatprep.subr.bf16.mxu1 %v3884_v47  ;;  %v533_v63 = vld [vmem:[#allocation6 + $0x120] sm:$0xff]  ;;  %v536_v1 = vld [vmem:[#allocation6 + $0x138] sm:$0xff]  ;;  %v543_v3 = vld [vmem:[#allocation6 + $0x170] sm:$0xff]  ;;  %v3915_v4 = vpack.c.bf16 %v514_v59, %v511_v58 }
  0x36   :  { %225 = vmatprep.mubr.f32.mxu0 %v3770_v0  ;;  %2936 = vmatpush1.bf16.msra.mxu0 %v3867_v29  ;;  %v540_v2 = vld [vmem:[#allocation6 + $0x158] sm:$0xff]  ;;  %v517_v5 = vld [vmem:[#allocation6 + $0xa0] sm:$0xff]  ;;  %v3924_v8 = vpack.c.bf16 %v536_v1, %v533_v63  ;;  %v539_v10 = vld [vmem:[#allocation6 + $0x150] sm:$0xff]  ;;  %v89_v46 = vsub.s32 2, %v80_v45 }
  0x37   :  { %2938 = vmatprep.subr.bf16.mxu0 %v3870_v30  ;;  %2579 = vmatmul.mubr.msk.f32.vlgmr.msra.gmra.mrb[0].mxu1 %vm94_vm0, %v56_v21  ;;  %v520_v6 = vld [vmem:[#allocation6 + $0xb8] sm:$0xff]  ;;  %v61_v7 = vld [vmem:[%s4523_s0 + $0x30] sm:$0xff]  ;;  %v3927_v9 = vpack.c.bf16 %v543_v3, %v540_v2  ;;  %v542_v11 = vld [vmem:[#allocation6 + $0x168] sm:$0xff] }
  0x38   :  { %2960 = vmatpush3.bf16.msra.mxu1 %v3884_v47  ;;  %2581 = vmatprep.mubr.msk.f32.mxu1 %vm94_vm0, %v57_v28  ;;  %v3932_v13 = vpack.c.bf16 %v520_v6, %v517_v5  ;;  %v523_v15 = vld [vmem:[#allocation6 + $0xd0] sm:$0xff]  ;;  %v526_v17 = vld [vmem:[#allocation6 + $0xe8] sm:$0xff]  ;;  %v3941_v19 = vpack.c.bf16 %v542_v11, %v539_v10  ;;  %v529_v21 = vld [vmem:[#allocation6 + $0x100] sm:$0xff] }
  0x39   :  { %2332 = vmatmul.mubr.msk.f32.gmra.mrb[6].mxu0 %vm94_vm0, %v58_v37  ;;  %2962 = vmatprep.subr.bf16.mxu1 %v3898_v57  ;;  %v62_v18 = vld [vmem:[%s4523_s0 + $0x38] sm:$0xff]  ;;  %v3945_v20 = vpack.c.bf16 %v526_v17, %v523_v15  ;;  %v532_v24 = vld [vmem:[#allocation6 + $0x118] sm:$0xff]  ;;  %v63_v25 = vld [vmem:[%s4523_s0 + $0x40] sm:$0xff] }
  0x3a   :  { %231 = vmatprep.mubr.f32.mxu0 %v3770_v0  ;;  %2940 = vmatpush1.bf16.msra.mxu0 %v3878_v38  ;;  %v64_v26 = vld [vmem:[%s4523_s0 + $0x48] sm:$0xff]  ;;  %v3961_v27 = vpack.c.bf16 %v532_v24, %v529_v21  ;;  %v535_v28 = vld [vmem:[#allocation6 + $0x130] sm:$0xff]  ;;  %v538_v31 = vld [vmem:[#allocation6 + $0x148] sm:$0xff] }
  0x3b   :  { %2942 = vmatprep.subr.bf16.mxu0 %v3881_v40  ;;  %2582 = vmatmul.mubr.msk.f32.gmra.mrb[2].mxu1 %vm94_vm0, %v58_v37  ;;  %v65_v32 = vld [vmem:[%s4523_s0 + $0x50] sm:$0xff]  ;;  %v66_v33 = vld [vmem:[%s4523_s0 + $0x58] sm:$0xff]  ;;  %v3976_v34 = vpack.c.bf16 %v538_v31, %v535_v28  ;;  %v544_v36 = vld [vmem:[#allocation6 + $0x178] sm:$0xff] }
  0x3c   :  { %2964 = vmatpush3.bf16.msra.mxu1 %v3898_v57  ;;  %2584 = vmatprep.mubr.msk.f32.mxu1 %vm94_vm0, %v59_v50  ;;  %v541_v35 = vld [vmem:[#allocation6 + $0x160] sm:$0xff]  ;;  %v67_v37 = vld [vmem:[%s4523_s0 + $0x60] sm:$0xff]  ;;  %v68_v39 = vld [vmem:[%s4523_s0 + $0x68] sm:$0xff] }
  0x3d   :  { %2333 = vmatmul.mubr.msk.f32.gmra.mrb[8].mxu0 %vm94_vm0, %v59_v50  ;;  %2966 = vmatprep.subr.bf16.mxu1 %v3915_v4  ;;  %v3990_v41 = vpack.c.bf16 %v544_v36, %v541_v35  ;;  %v69_v42 = vld [vmem:[%s4523_s0 + $0x70] sm:$0xff]  ;;  %v70_v43 = vld [vmem:[%s4523_s0 + $0x78] sm:$0xff]  ;;  %v77_v48 = vld [vmem:[%s4526_s3] sm:$0x7] }
  0x3e   :  { %237 = vmatprep.mubr.f32.mxu0 %v3770_v0  ;;  %2944 = vmatpush1.bf16.msra.mxu0 %v3891_v51  ;;  %v4062_v53 = vrot.slane %v77_v48, %v89_v46 }
  0x3f   :  { %2946 = vmatprep.subr.bf16.mxu0 %v3894_v52  ;;  %2585 = vmatmul.mubr.msk.f32.gmra.mrb[4].mxu1 %vm94_vm0, %v60_v60 }
  0x40   :  { %2968 = vmatpush3.bf16.msra.mxu1 %v3915_v4  ;;  %2587 = vmatprep.mubr.msk.f32.mxu1 %vm94_vm0, %v61_v7 }
  0x41   :  { %2334 = vmatmul.mubr.msk.f32.gmra.mrb[10].mxu0 %vm94_vm0, %v60_v60  ;;  %2970 = vmatprep.subr.bf16.mxu1 %v3932_v13 }
  0x42   :  { %243 = vmatprep.mubr.f32.mxu0 %v3770_v0  ;;  %2948 = vmatpush1.bf16.msra.mxu0 %v3907_v61 }
  0x43   :  { %2950 = vmatprep.subr.bf16.mxu0 %v3910_v62  ;;  %2588 = vmatmul.mubr.msk.f32.gmra.mrb[6].mxu1 %vm94_vm0, %v62_v18 }
  0x44   :  { %2972 = vmatpush3.bf16.msra.mxu1 %v3932_v13  ;;  %2590 = vmatprep.mubr.msk.f32.mxu1 %vm94_vm0, %v63_v25 }
  0x45   :  { %2335 = vmatmul.mubr.msk.f32.gmra.mrb[12].mxu0 %vm94_vm0, %v61_v7  ;;  %2974 = vmatprep.subr.bf16.mxu1 %v3945_v20 }
  0x46   :  { %249 = vmatprep.mubr.f32.mxu0 %v3770_v0  ;;  %2952 = vmatpush1.bf16.msra.mxu0 %v3924_v8 }
  0x47   :  { %2954 = vmatprep.subr.bf16.mxu0 %v3927_v9  ;;  %2591 = vmatmul.mubr.msk.f32.gmra.mrb[8].mxu1 %vm94_vm0, %v64_v26 }
  0x48   :  { %2976 = vmatpush3.bf16.msra.mxu1 %v3945_v20  ;;  %2593 = vmatprep.mubr.msk.f32.mxu1 %vm94_vm0, %v65_v32 }
  0x49   :  { %2336 = vmatmul.mubr.msk.f32.gmra.mrb[14].mxu0 %vm94_vm0, %v62_v18  ;;  %2978 = vmatprep.subr.bf16.mxu1 %v3961_v27 }
  0x4a   :  { %255 = vmatprep.mubr.f32.mxu0 %v3770_v0  ;;  %2956 = vmatpush1.bf16.msra.mxu0 %v3941_v19 }
  0x4b   :  { %2990 = vmatprep.subr.bf16.mxu0 %v3843_v12  ;;  %2594 = vmatmul.mubr.msk.f32.gmra.mrb[10].mxu1 %vm94_vm0, %v66_v33 }
  0x4c   :  { %2980 = vmatpush3.bf16.msra.mxu1 %v3961_v27  ;;  %2596 = vmatprep.mubr.msk.f32.mxu1 %vm94_vm0, %v67_v37 }
  0x4d   :  { %2337 = vmatmul.mubr.msk.f32.gmra.mrb[16].mxu0 %vm94_vm0, %v63_v25  ;;  %2982 = vmatprep.subr.bf16.mxu1 %v3976_v34 }
  0x4e   :  { %261 = vmatprep.mubr.f32.mxu0 %v3770_v0 }
  0x4f   :  { %2597 = vmatmul.mubr.msk.f32.gmra.mrb[12].mxu1 %vm94_vm0, %v68_v39 }
  0x50   :  { %2984 = vmatpush3.bf16.msra.mxu1 %v3976_v34  ;;  %2599 = vmatprep.mubr.msk.f32.mxu1 %vm94_vm0, %v69_v42 }
  0x51   :  { %2338 = vmatmul.mubr.msk.f32.gmra.mrb[18].mxu0 %vm94_vm0, %v64_v26  ;;  %2986 = vmatprep.subr.bf16.mxu1 %v3990_v41 }
  0x52   :  { %267 = vmatprep.mubr.f32.mxu0 %v3770_v0 }
  0x53   :  { %2600 = vmatmul.mubr.msk.f32.gmra.mrb[14].mxu1 %vm94_vm0, %v70_v43 }
  0x54   :  { %2988 = vmatpush3.bf16.msra.mxu1 %v3990_v41  ;;  %2634 = vmatprep.mubr.f32.mxu1 %v3770_v0 }
  0x55   :  { %2339 = vmatmul.mubr.msk.f32.gmra.mrb[20].mxu0 %vm94_vm0, %v65_v32  ;;  %3022 = vmatprep.subr.bf16.mxu1 %v3884_v47 }
  0x56   :  { %273 = vmatprep.mubr.f32.mxu0 %v3770_v0 }
  0x57   :  { %2635 = vmatmul.mubr.f32.vlgmr.msra.gmra.mrb[16].mxu1 %v3770_v0 }
  0x58   :  { %3024 = vmatpush3.bf16.msra.mxu1 %v3884_v47 }
  0x59   :  { %2340 = vmatmul.mubr.msk.f32.gmra.mrb[22].mxu0 %vm94_vm0, %v66_v33  ;;  %3026 = vmatprep.subr.bf16.mxu1 %v3898_v57 }
  0x5a   :  { %279 = vmatprep.mubr.f32.mxu0 %v3770_v0 }
  0x5c   :  { %3028 = vmatpush3.bf16.msra.mxu1 %v3898_v57 }
  0x5d   :  { %2341 = vmatmul.mubr.msk.f32.gmra.mrb[24].mxu0 %vm94_vm0, %v67_v37  ;;  %3030 = vmatprep.subr.bf16.mxu1 %v3915_v4 }
  0x5e   :  { %285 = vmatprep.mubr.f32.mxu0 %v3770_v0 }
  0x60   :  { %3032 = vmatpush3.bf16.msra.mxu1 %v3915_v4 }
  0x61   :  { %2342 = vmatmul.mubr.msk.f32.gmra.mrb[26].mxu0 %vm94_vm0, %v68_v39  ;;  %3034 = vmatprep.subr.bf16.mxu1 %v3932_v13 }
  0x62   :  { %291 = vmatprep.mubr.f32.mxu0 %v3770_v0 }
  0x64   :  { %3036 = vmatpush3.bf16.msra.mxu1 %v3932_v13 }
  0x65   :  { %2343 = vmatmul.mubr.msk.f32.gmra.mrb[28].mxu0 %vm94_vm0, %v69_v42  ;;  %3038 = vmatprep.subr.bf16.mxu1 %v3945_v20  ;;  %v81_v42 = vsub.s32 0, %v80_v45 }
  0x66   :  { %297 = vmatprep.mubr.f32.mxu0 %v3770_v0 }
  0x67   :  { %v4106_v44 = vrot.slane %v77_v48, %v81_v42 }
  0x68   :  { %3040 = vmatpush3.bf16.msra.mxu1 %v3945_v20 }
  0x69   :  { %2344 = vmatmul.mubr.msk.f32.gmra.mrb[30].mxu0 %vm94_vm0, %v70_v43  ;;  %3042 = vmatprep.subr.bf16.mxu1 %v3961_v27  ;;  %v85_v43 = vsub.s32 1, %v80_v45 }
  0x6a   :  { %625 = vmatprep.mubr.f32.mxu0 %v3770_v0 }
  0x6c   :  { %3044 = vmatpush3.bf16.msra.mxu1 %v3961_v27 }
  0x6d   :  { %626 = vmatmul.mubr.f32.vlgmr.msra.gmra.mrb[0].mxu0 %v3770_v0  ;;  %3046 = vmatprep.subr.bf16.mxu1 %v3976_v34 }
  0x6e   :  { %631 = vmatprep.mubr.f32.mxu0 %v3770_v0  ;;  %2992 = vmatpush1.bf16.msra.mxu0 %v3845_v14 }
  0x6f   :  { %2994 = vmatprep.subr.bf16.mxu0 %v3848_v16 }
  0x70   :  { %3048 = vmatpush3.bf16.msra.mxu1 %v3976_v34 }
  0x71   :  { %632 = vmatmul.mubr.f32.gmra.mrb[2].mxu0 %v3770_v0  ;;  %3050 = vmatprep.subr.bf16.mxu1 %v3990_v41 }
  0x72   :  { %2996 = vmatpush1.bf16.msra.mxu0 %v3856_v22  ;;  %830 = vmatprep.mubr.f32.mxu0 %v3770_v0 }
  0x73   :  { %2998 = vmatprep.subr.bf16.mxu0 %v3859_v23 }
  0x74   :  { %3052 = vmatpush3.bf16.msra.mxu1 %v3990_v41 }
  0x75   :  { %3086 = vmatprep.subr.bf16.mxu1 %v3884_v47 }
  0x76   :  { %3000 = vmatpush1.bf16.msra.mxu0 %v3867_v29 }
  0x77   :  { %3002 = vmatprep.subr.bf16.mxu0 %v3870_v30 }
  0x7a   :  { %3004 = vmatpush1.bf16.msra.mxu0 %v3878_v38 }
  0x7b   :  { %3006 = vmatprep.subr.bf16.mxu0 %v3881_v40 }
  0x7e   :  { %3008 = vmatpush1.bf16.msra.mxu0 %v3891_v51 }
  0x7f   :  { %3010 = vmatprep.subr.bf16.mxu0 %v3894_v52 }
  0x82   :  { %3012 = vmatpush1.bf16.msra.mxu0 %v3907_v61 }
  0x83   :  { %3014 = vmatprep.subr.bf16.mxu0 %v3910_v62 }
  0x86   :  { %3016 = vmatpush1.bf16.msra.mxu0 %v3924_v8 }
  0x87   :  { %3018 = vmatprep.subr.bf16.mxu0 %v3927_v9 }
  0x8a   :  { %3020 = vmatpush1.bf16.msra.mxu0 %v3941_v19 }
  0x8b   :  { %3054 = vmatprep.subr.bf16.mxu0 %v3843_v12 }
 0x10a   :  { %v4058_v49 = vpop.f32.mrb[0].mxu1 }
 0x10b   :  { %v4060_v50 = vpop.f32.mrb[1].mxu1 }
 0x10e   :  { %v2583_v54 = vpop.f32.mrb[2].mxu1 }
 0x10f   :  { %v4065_v55 = vadd.f32 %v2583_v54, %v4062_v53  ;;  %v380_v56 = vpop.f32.mrb[3].mxu1  ;;  %v4108_v54 = vrot.slane %v77_v48, %v85_v43  ;;  %v4117_v43 = vld [vmem:[%s4527_s4] ss:$0 sm:$0xff] }
 0x110   :  { %v4068_v58 = vadd.f32 %v380_v56, %v4062_v53 }
 0x112   :  { %v2586_v59 = vpop.f32.mrb[4].mxu1 }
 0x113   :  { %v4071_v60 = vadd.f32 %v2586_v59, %v4062_v53  ;;  %v390_v63 = vpop.f32.mrb[5].mxu1 }
 0x114   :  { %v4074_v1 = vadd.f32 %v390_v63, %v4062_v53 }
 0x116   :  { %v2589_v2 = vpop.f32.mrb[6].mxu1 }
 0x117   :  { %v4077_v3 = vadd.f32 %v2589_v2, %v4062_v53  ;;  %v400_v5 = vpop.f32.mrb[7].mxu1 }
 0x118   :  { %v4080_v6 = vadd.f32 %v400_v5, %v4062_v53 }
 0x11a   :  { %v2592_v7 = vpop.f32.mrb[8].mxu1 }
 0x11b   :  { %v4083_v10 = vadd.f32 %v2592_v7, %v4062_v53  ;;  %v410_v11 = vpop.f32.mrb[9].mxu1 }
 0x11c   :  { %v4086_v15 = vadd.f32 %v410_v11, %v4062_v53 }
 0x11e   :  { %v2595_v17 = vpop.f32.mrb[10].mxu1 }
 0x11f   :  { %v4089_v18 = vadd.f32 %v2595_v17, %v4062_v53  ;;  %v420_v21 = vpop.f32.mrb[11].mxu1 }
 0x120   :  { %v4092_v24 = vadd.f32 %v420_v21, %v4062_v53 }
 0x122   :  { %v2598_v25 = vpop.f32.mrb[12].mxu1 }
 0x123   :  { %v4095_v26 = vadd.f32 %v2598_v25, %v4062_v53  ;;  %v430_v28 = vpop.f32.mrb[13].mxu1 }
 0x124   :  { %v4098_v31 = vadd.f32 %v430_v28, %v4062_v53 }
 0x126   :  { %v2601_v32 = vpop.f32.mrb[14].mxu1 }
 0x127   :  { %v4101_v33 = vadd.f32 %v2601_v32, %v4062_v53  ;;  %v440_v35 = vpop.f32.mrb[15].mxu1 }
 0x128   :  { %v4104_v36 = vadd.f32 %v440_v35, %v4062_v53 }
 0x12a   :  { %v2636_v37 = vpop.f32.mrb[16].mxu1 }
 0x12b   :  { %v704_v39 = vpop.f32.mrb[17].mxu1 }
 0x140   :  { %v627_v46 = vpop.f32.mrb[0].mxu0 }
 0x141   :  { %v3461_v56 = vadd.f32 %v627_v46, %v4106_v44  ;;  %v629_v59 = vpop.f32.mrb[1].mxu0 }
 0x142   :  { %v3462_v2 = vadd.f32 %v629_v59, %v4108_v54  ;;  %v741_v59 = vadd.f32 %v4117_v43, %v704_v39 }
 0x143   :  { %v2362_v63 = vmul.f32 -1.442695, %v3461_v56 }
 0x144   :  { %v633_v5 = vpop.f32.mrb[2].mxu0  ;;  %v2364_v45 = vmul.f32 -1.442695, %v3462_v2 }
 0x145   :  { %3533 = vpow2.f32 %v2362_v63  ;;  %v3463_v7 = vadd.f32 %v633_v5, %v4106_v44  ;;  %v635_v11 = vpop.f32.mrb[3].mxu0  ;;  %v371_v5 = vadd.f32 %v4060_v50, %v4062_v53 }
 0x146   :  { %v3464_v21 = vadd.f32 %v635_v11, %v4108_v54  ;;  %v742_v11 = vadd.f32 %v2636_v37, %v4117_v43 }
 0x147   :  { %v2363_v17 = vmul.f32 -1.442695, %v3463_v7 }
 0x148   :  { %v2365_v25 = vmul.f32 -1.442695, %v3464_v21 }
 0x149   :  { %3535 = vpow2.f32 %v2363_v17 }
 0x14a   :  { %3537 = vpow2.f32 %v2364_v45  ;;  %v376_v45 = vadd.f32 %v4058_v49, %v4062_v53 }
 0x14b   :  { %3539 = vpow2.f32 %v2365_v25 }
 0x14f   :  { %v3534_v48 = vpop.eup %3533 }
 0x150   :  { %v721_v28 = vadd.f32 1.0, %v3534_v48 }
 0x152   :  { %3541 = vrcp.f32 %v721_v28 }
 0x153   :  { %v3536_v32 = vpop.eup %3535 }
 0x154   :  { %v722_v35 = vadd.f32 1.0, %v3536_v32  ;;  %v3538_v42 = vpop.eup %3537 }
 0x155   :  { %v3540_v46 = vpop.eup %3539  ;;  %v735_v56 = vadd.f32 1.0, %v3538_v42 }
 0x156   :  { %3543 = vrcp.f32 %v722_v35  ;;  %v736_v2 = vadd.f32 1.0, %v3540_v46 }
 0x157   :  { %3545 = vrcp.f32 %v735_v56 }
 0x158   :  { %3547 = vrcp.f32 %v736_v2 }
 0x15c   :  { %v3542_v63 = vpop.eup %3541 }
 0x15d   :  { %v743_v7 = vmul.f32 %v3542_v63, %v741_v59 }
 0x15f   :  { %v745_v17 = vadd.f32 %v743_v7, %v371_v5 }
 0x160   :  { %v3544_v21 = vpop.eup %3543 }
 0x161   :  { %v744_v25 = vmul.f32 %v3544_v21, %v742_v11  ;;  %3549 = vtanh.f32 %v745_v17  ;;  %v3546_v39 = vpop.eup %3545 }
 0x162   :  { %v3548_v28 = vpop.eup %3547  ;;  %v749_v32 = vsub.f32 1.0, %v3546_v39  ;;  %v753_v50 = vmul.f32 0.0, %v3546_v39 }
 0x163   :  { %v746_v48 = vadd.f32 %v744_v25, %v376_v45  ;;  %v750_v56 = vsub.f32 1.0, %v3548_v28  ;;  %v754_v49 = vmul.f32 0.0, %v3548_v28 }
 0x165   :  { %3551 = vtanh.f32 %v746_v48 }
 0x16b   :  { %v3550_v35 = vpop.eup %3549 }
 0x16c   :  { %v751_v42 = vmul.f32 %v3550_v35, %v749_v32 }
 0x16e   :  { %v4125_v46 = vadd.f32 %v753_v50, %v751_v42 }
 0x16f   :  { %v3552_v37 = vpop.eup %3551 }
 0x170   :  { %831 = vmatmul.mubr.f32.vlgmr.msra.gmra.mrb[4].mxu0 %v4125_v46  ;;  %2669 = vmatprep.mubr.f32.mxu1 %v4125_v46  ;;  %v752_v59 = vmul.f32 %v3552_v37, %v750_v56 }
 0x171   :  { %836 = vmatprep.mubr.f32.mxu0 %v3770_v0  ;;  %3056 = vmatpush1.bf16.msra.mxu0 %v3845_v14 }
 0x172   :  { %v4131_v53 = vadd.f32 %v754_v49, %v752_v59  ;;  %3058 = vmatprep.subr.bf16.mxu0 %v3848_v16 }
 0x174   :  { %837 = vmatmul.mubr.f32.gmra.mrb[6].mxu0 %v4131_v53  ;;  %2670 = vmatmul.mubr.f32.vlgmr.msra.gmra.mrb[18].mxu1 %v4131_v53 }
 0x175   :  { %3060 = vmatpush1.bf16.msra.mxu0 %v3856_v22  ;;  %3088 = vmatpush3.bf16.msra.mxu1 %v3884_v47 }
 0x176   :  { %3062 = vmatprep.subr.bf16.mxu0 %v3859_v23  ;;  %3090 = vmatprep.subr.bf16.mxu1 %v3898_v57 }
 0x177   :  { %1035 = vmatprep.mubr.f32.mxu0 %v3770_v0 }
 0x179   :  { %3064 = vmatpush1.bf16.msra.mxu0 %v3867_v29  ;;  %3092 = vmatpush3.bf16.msra.mxu1 %v3898_v57 }
 0x17a   :  { %3066 = vmatprep.subr.bf16.mxu0 %v3870_v30  ;;  %3094 = vmatprep.subr.bf16.mxu1 %v3915_v4 }
 0x17d   :  { %3068 = vmatpush1.bf16.msra.mxu0 %v3878_v38  ;;  %3096 = vmatpush3.bf16.msra.mxu1 %v3915_v4 }
 0x17e   :  { %3070 = vmatprep.subr.bf16.mxu0 %v3881_v40  ;;  %3098 = vmatprep.subr.bf16.mxu1 %v3932_v13 }
 0x181   :  { %3072 = vmatpush1.bf16.msra.mxu0 %v3891_v51  ;;  %3100 = vmatpush3.bf16.msra.mxu1 %v3932_v13 }
 0x182   :  { %3074 = vmatprep.subr.bf16.mxu0 %v3894_v52  ;;  %3102 = vmatprep.subr.bf16.mxu1 %v3945_v20 }
 0x185   :  { %3076 = vmatpush1.bf16.msra.mxu0 %v3907_v61  ;;  %3104 = vmatpush3.bf16.msra.mxu1 %v3945_v20 }
 0x186   :  { %3078 = vmatprep.subr.bf16.mxu0 %v3910_v62  ;;  %3106 = vmatprep.subr.bf16.mxu1 %v3961_v27 }
 0x189   :  { %3080 = vmatpush1.bf16.msra.mxu0 %v3924_v8  ;;  %3108 = vmatpush3.bf16.msra.mxu1 %v3961_v27 }
 0x18a   :  { %3082 = vmatprep.subr.bf16.mxu0 %v3927_v9  ;;  %3110 = vmatprep.subr.bf16.mxu1 %v3976_v34 }
 0x18d   :  { %3084 = vmatpush1.bf16.msra.mxu0 %v3941_v19  ;;  %3112 = vmatpush3.bf16.msra.mxu1 %v3976_v34 }
 0x18e   :  { %3114 = vmatprep.subr.bf16.mxu1 %v3990_v41  ;;  %3118 = vmatprep.subr.bf16.mxu0 %v3843_v12 }
 0x191   :  { %3116 = vmatpush3.bf16.msra.mxu1 %v3990_v41 }
 0x192   :  { %3150 = vmatprep.subr.bf16.mxu1 %v3884_v47 }
 0x243   :  { %v832_v63 = vpop.f32.mrb[4].mxu0 }
 0x244   :  { %v3465_v2 = vadd.f32 %v832_v63, %v4106_v44  ;;  %v834_v5 = vpop.f32.mrb[5].mxu0 }
 0x245   :  { %v3466_v11 = vadd.f32 %v834_v5, %v4108_v54 }
 0x246   :  { %v2366_v7 = vmul.f32 -1.442695, %v3465_v2 }
 0x247   :  { %v838_v17 = vpop.f32.mrb[6].mxu0  ;;  %v2671_v21 = vpop.f32.mrb[18].mxu1  ;;  %v2368_v32 = vmul.f32 -1.442695, %v3466_v11 }
 0x248   :  { %3553 = vpow2.f32 %v2366_v7  ;;  %v3467_v45 = vadd.f32 %v838_v17, %v4106_v44  ;;  %v840_v25 = vpop.f32.mrb[7].mxu0  ;;  %v909_v48 = vpop.f32.mrb[19].mxu1  ;;  %v947_v11 = vadd.f32 %v2671_v21, %v4117_v43 }
 0x249   :  { %v3468_v28 = vadd.f32 %v840_v25, %v4108_v54  ;;  %v946_v2 = vadd.f32 %v4117_v43, %v909_v48 }
 0x24a   :  { %v2367_v39 = vmul.f32 -1.442695, %v3467_v45 }
 0x24b   :  { %v2369_v35 = vmul.f32 -1.442695, %v3468_v28 }
 0x24c   :  { %3555 = vpow2.f32 %v2367_v39 }
 0x24d   :  { %3557 = vpow2.f32 %v2368_v32 }
 0x24e   :  { %3559 = vpow2.f32 %v2369_v35 }
 0x252   :  { %v3554_v42 = vpop.eup %3553 }
 0x253   :  { %v926_v50 = vadd.f32 1.0, %v3554_v42 }
 0x255   :  { %3561 = vrcp.f32 %v926_v50 }
 0x256   :  { %v3556_v56 = vpop.eup %3555 }
 0x257   :  { %v927_v37 = vadd.f32 1.0, %v3556_v56  ;;  %v3558_v59 = vpop.eup %3557 }
 0x258   :  { %v3560_v49 = vpop.eup %3559  ;;  %v940_v63 = vadd.f32 1.0, %v3558_v59 }
 0x259   :  { %3563 = vrcp.f32 %v927_v37  ;;  %v941_v7 = vadd.f32 1.0, %v3560_v49 }
 0x25a   :  { %3565 = vrcp.f32 %v940_v63 }
 0x25b   :  { %3567 = vrcp.f32 %v941_v7 }
 0x25f   :  { %v3562_v5 = vpop.eup %3561 }
 0x260   :  { %v948_v17 = vmul.f32 %v3562_v5, %v946_v2 }
 0x262   :  { %v950_v45 = vadd.f32 %v948_v17, %v4068_v58 }
 0x263   :  { %v3564_v25 = vpop.eup %3563 }
 0x264   :  { %v949_v39 = vmul.f32 %v3564_v25, %v947_v11  ;;  %3569 = vtanh.f32 %v950_v45  ;;  %v3566_v32 = vpop.eup %3565 }
 0x265   :  { %v3568_v35 = vpop.eup %3567  ;;  %v954_v42 = vsub.f32 1.0, %v3566_v32  ;;  %v958_v56 = vmul.f32 %v3566_v32, %v4125_v46 }
 0x266   :  { %v951_v28 = vadd.f32 %v949_v39, %v4065_v55  ;;  %v955_v59 = vsub.f32 1.0, %v3568_v35  ;;  %v959_v49 = vmul.f32 %v3568_v35, %v4131_v53 }
 0x268   :  { %3571 = vtanh.f32 %v951_v28 }
 0x26e   :  { %v3570_v50 = vpop.eup %3569 }
 0x26f   :  { %v956_v48 = vmul.f32 %v3570_v50, %v954_v42 }
 0x271   :  { %v4176_v37 = vadd.f32 %v958_v56, %v956_v48 }
 0x272   :  { %v3572_v21 = vpop.eup %3571 }
 0x273   :  { %1036 = vmatmul.mubr.f32.vlgmr.msra.gmra.mrb[8].mxu0 %v4176_v37  ;;  %2704 = vmatprep.mubr.f32.mxu1 %v4176_v37  ;;  %v957_v58 = vmul.f32 %v3572_v21, %v955_v59 }
 0x274   :  { %1041 = vmatprep.mubr.f32.mxu0 %v3770_v0  ;;  %3120 = vmatpush1.bf16.msra.mxu0 %v3845_v14 }
 0x275   :  { %v4183_v55 = vadd.f32 %v959_v49, %v957_v58  ;;  %3122 = vmatprep.subr.bf16.mxu0 %v3848_v16 }
 0x277   :  { %1042 = vmatmul.mubr.f32.gmra.mrb[10].mxu0 %v4183_v55  ;;  %2705 = vmatmul.mubr.f32.vlgmr.msra.gmra.mrb[20].mxu1 %v4183_v55 }
 0x278   :  { %3124 = vmatpush1.bf16.msra.mxu0 %v3856_v22  ;;  %3152 = vmatpush3.bf16.msra.mxu1 %v3884_v47 }
 0x279   :  { %3126 = vmatprep.subr.bf16.mxu0 %v3859_v23  ;;  %3154 = vmatprep.subr.bf16.mxu1 %v3898_v57 }
 0x27a   :  { %1240 = vmatprep.mubr.f32.mxu0 %v3770_v0 }
 0x27c   :  { %3128 = vmatpush1.bf16.msra.mxu0 %v3867_v29  ;;  %3156 = vmatpush3.bf16.msra.mxu1 %v3898_v57 }
 0x27d   :  { %3130 = vmatprep.subr.bf16.mxu0 %v3870_v30  ;;  %3158 = vmatprep.subr.bf16.mxu1 %v3915_v4 }
 0x280   :  { %3132 = vmatpush1.bf16.msra.mxu0 %v3878_v38  ;;  %3160 = vmatpush3.bf16.msra.mxu1 %v3915_v4 }
 0x281   :  { %3134 = vmatprep.subr.bf16.mxu0 %v3881_v40  ;;  %3162 = vmatprep.subr.bf16.mxu1 %v3932_v13 }
 0x284   :  { %3136 = vmatpush1.bf16.msra.mxu0 %v3891_v51  ;;  %3164 = vmatpush3.bf16.msra.mxu1 %v3932_v13 }
 0x285   :  { %3138 = vmatprep.subr.bf16.mxu0 %v3894_v52  ;;  %3166 = vmatprep.subr.bf16.mxu1 %v3945_v20 }
 0x288   :  { %3140 = vmatpush1.bf16.msra.mxu0 %v3907_v61  ;;  %3168 = vmatpush3.bf16.msra.mxu1 %v3945_v20 }
 0x289   :  { %3142 = vmatprep.subr.bf16.mxu0 %v3910_v62  ;;  %3170 = vmatprep.subr.bf16.mxu1 %v3961_v27 }
 0x28c   :  { %3144 = vmatpush1.bf16.msra.mxu0 %v3924_v8  ;;  %3172 = vmatpush3.bf16.msra.mxu1 %v3961_v27 }
 0x28d   :  { %3146 = vmatprep.subr.bf16.mxu0 %v3927_v9  ;;  %3174 = vmatprep.subr.bf16.mxu1 %v3976_v34 }
 0x290   :  { %3148 = vmatpush1.bf16.msra.mxu0 %v3941_v19  ;;  %3176 = vmatpush3.bf16.msra.mxu1 %v3976_v34 }
 0x291   :  { %3178 = vmatprep.subr.bf16.mxu1 %v3990_v41  ;;  %3182 = vmatprep.subr.bf16.mxu0 %v3843_v12 }
 0x294   :  { %3180 = vmatpush3.bf16.msra.mxu1 %v3990_v41 }
 0x295   :  { %3214 = vmatprep.subr.bf16.mxu1 %v3884_v47 }
 0x346   :  { %v1037_v46 = vpop.f32.mrb[8].mxu0 }
 0x347   :  { %v3469_v53 = vadd.f32 %v1037_v46, %v4106_v44  ;;  %v1039_v63 = vpop.f32.mrb[9].mxu0 }
 0x348   :  { %v3470_v5 = vadd.f32 %v1039_v63, %v4108_v54 }
 0x349   :  { %v2370_v2 = vmul.f32 -1.442695, %v3469_v53 }
 0x34a   :  { %v1043_v7 = vpop.f32.mrb[10].mxu0  ;;  %v2706_v17 = vpop.f32.mrb[20].mxu1  ;;  %v2372_v32 = vmul.f32 -1.442695, %v3470_v5 }
 0x34b   :  { %3573 = vpow2.f32 %v2370_v2  ;;  %v3471_v11 = vadd.f32 %v1043_v7, %v4106_v44  ;;  %v1045_v45 = vpop.f32.mrb[11].mxu0  ;;  %v1114_v25 = vpop.f32.mrb[21].mxu1  ;;  %v1152_v2 = vadd.f32 %v2706_v17, %v4117_v43 }
 0x34c   :  { %v3472_v28 = vadd.f32 %v1045_v45, %v4108_v54  ;;  %v1151_v49 = vadd.f32 %v4117_v43, %v1114_v25 }
 0x34d   :  { %v2371_v39 = vmul.f32 -1.442695, %v3471_v11 }
 0x34e   :  { %v2373_v35 = vmul.f32 -1.442695, %v3472_v28 }
 0x34f   :  { %3575 = vpow2.f32 %v2371_v39 }
 0x350   :  { %3577 = vpow2.f32 %v2372_v32 }
 0x351   :  { %3579 = vpow2.f32 %v2373_v35 }
 0x355   :  { %v3574_v42 = vpop.eup %3573 }
 0x356   :  { %v1131_v50 = vadd.f32 1.0, %v3574_v42 }
 0x358   :  { %3581 = vrcp.f32 %v1131_v50 }
 0x359   :  { %v3576_v48 = vpop.eup %3575 }
 0x35a   :  { %v1132_v56 = vadd.f32 1.0, %v3576_v48  ;;  %v3578_v59 = vpop.eup %3577 }
 0x35b   :  { %v3580_v21 = vpop.eup %3579  ;;  %v1145_v58 = vadd.f32 1.0, %v3578_v59 }
 0x35c   :  { %3583 = vrcp.f32 %v1132_v56  ;;  %v1146_v53 = vadd.f32 1.0, %v3580_v21 }
 0x35d   :  { %3585 = vrcp.f32 %v1145_v58 }
 0x35e   :  { %3587 = vrcp.f32 %v1146_v53 }
 0x362   :  { %v3582_v46 = vpop.eup %3581 }
 0x363   :  { %v1153_v63 = vmul.f32 %v3582_v46, %v1151_v49 }
 0x365   :  { %v1155_v5 = vadd.f32 %v1153_v63, %v4074_v1 }
 0x366   :  { %v3584_v7 = vpop.eup %3583 }
 0x367   :  { %v1154_v11 = vmul.f32 %v3584_v7, %v1152_v2  ;;  %3589 = vtanh.f32 %v1155_v5  ;;  %v3586_v39 = vpop.eup %3585 }
 0x368   :  { %v3588_v28 = vpop.eup %3587  ;;  %v1159_v32 = vsub.f32 1.0, %v3586_v39  ;;  %v1163_v42 = vmul.f32 %v3586_v39, %v4176_v37 }
 0x369   :  { %v1156_v45 = vadd.f32 %v1154_v11, %v4071_v60  ;;  %v1160_v48 = vsub.f32 1.0, %v3588_v28  ;;  %v1164_v56 = vmul.f32 %v3588_v28, %v4183_v55 }
 0x36b   :  { %3591 = vtanh.f32 %v1156_v45 }
 0x371   :  { %v3590_v35 = vpop.eup %3589 }
 0x372   :  { %v1161_v25 = vmul.f32 %v3590_v35, %v1159_v32 }
 0x374   :  { %v4228_v50 = vadd.f32 %v1163_v42, %v1161_v25 }
 0x375   :  { %v3592_v17 = vpop.eup %3591 }
 0x376   :  { %1241 = vmatmul.mubr.f32.vlgmr.msra.gmra.mrb[12].mxu0 %v4228_v50  ;;  %2739 = vmatprep.mubr.f32.mxu1 %v4228_v50  ;;  %v1162_v1 = vmul.f32 %v3592_v17, %v1160_v48 }
 0x377   :  { %1246 = vmatprep.mubr.f32.mxu0 %v3770_v0  ;;  %3184 = vmatpush1.bf16.msra.mxu0 %v3845_v14 }
 0x378   :  { %v4235_v60 = vadd.f32 %v1164_v56, %v1162_v1  ;;  %3186 = vmatprep.subr.bf16.mxu0 %v3848_v16 }
 0x37a   :  { %1247 = vmatmul.mubr.f32.gmra.mrb[14].mxu0 %v4235_v60  ;;  %2740 = vmatmul.mubr.f32.vlgmr.msra.gmra.mrb[22].mxu1 %v4235_v60 }
 0x37b   :  { %3188 = vmatpush1.bf16.msra.mxu0 %v3856_v22  ;;  %3216 = vmatpush3.bf16.msra.mxu1 %v3884_v47 }
 0x37c   :  { %3190 = vmatprep.subr.bf16.mxu0 %v3859_v23  ;;  %3218 = vmatprep.subr.bf16.mxu1 %v3898_v57 }
 0x37d   :  { %1445 = vmatprep.mubr.f32.mxu0 %v3770_v0 }
 0x37f   :  { %3192 = vmatpush1.bf16.msra.mxu0 %v3867_v29  ;;  %3220 = vmatpush3.bf16.msra.mxu1 %v3898_v57 }
 0x380   :  { %3194 = vmatprep.subr.bf16.mxu0 %v3870_v30  ;;  %3222 = vmatprep.subr.bf16.mxu1 %v3915_v4 }
 0x383   :  { %3196 = vmatpush1.bf16.msra.mxu0 %v3878_v38  ;;  %3224 = vmatpush3.bf16.msra.mxu1 %v3915_v4 }
 0x384   :  { %3198 = vmatprep.subr.bf16.mxu0 %v3881_v40  ;;  %3226 = vmatprep.subr.bf16.mxu1 %v3932_v13 }
 0x387   :  { %3200 = vmatpush1.bf16.msra.mxu0 %v3891_v51  ;;  %3228 = vmatpush3.bf16.msra.mxu1 %v3932_v13 }
 0x388   :  { %3202 = vmatprep.subr.bf16.mxu0 %v3894_v52  ;;  %3230 = vmatprep.subr.bf16.mxu1 %v3945_v20 }
 0x38b   :  { %3204 = vmatpush1.bf16.msra.mxu0 %v3907_v61  ;;  %3232 = vmatpush3.bf16.msra.mxu1 %v3945_v20 }
 0x38c   :  { %3206 = vmatprep.subr.bf16.mxu0 %v3910_v62  ;;  %3234 = vmatprep.subr.bf16.mxu1 %v3961_v27 }
 0x38f   :  { %3208 = vmatpush1.bf16.msra.mxu0 %v3924_v8  ;;  %3236 = vmatpush3.bf16.msra.mxu1 %v3961_v27 }
 0x390   :  { %3210 = vmatprep.subr.bf16.mxu0 %v3927_v9  ;;  %3238 = vmatprep.subr.bf16.mxu1 %v3976_v34 }
 0x393   :  { %3212 = vmatpush1.bf16.msra.mxu0 %v3941_v19  ;;  %3240 = vmatpush3.bf16.msra.mxu1 %v3976_v34 }
 0x394   :  { %3242 = vmatprep.subr.bf16.mxu1 %v3990_v41  ;;  %3246 = vmatprep.subr.bf16.mxu0 %v3843_v12 }
 0x397   :  { %3244 = vmatpush3.bf16.msra.mxu1 %v3990_v41 }
 0x398   :  { %3278 = vmatprep.subr.bf16.mxu1 %v3884_v47 }
 0x449   :  { %v1242_v37 = vpop.f32.mrb[12].mxu0 }
 0x44a   :  { %v3473_v55 = vadd.f32 %v1242_v37, %v4106_v44  ;;  %v1244_v59 = vpop.f32.mrb[13].mxu0 }
 0x44b   :  { %v3474_v58 = vadd.f32 %v1244_v59, %v4108_v54 }
 0x44c   :  { %v2374_v21 = vmul.f32 -1.442695, %v3473_v55 }
 0x44d   :  { %v1248_v49 = vpop.f32.mrb[14].mxu0  ;;  %v2741_v46 = vpop.f32.mrb[22].mxu1  ;;  %v2376_v11 = vmul.f32 -1.442695, %v3474_v58 }
 0x44e   :  { %3593 = vpow2.f32 %v2374_v21  ;;  %v3475_v53 = vadd.f32 %v1248_v49, %v4106_v44  ;;  %v1250_v63 = vpop.f32.mrb[15].mxu0  ;;  %v1319_v2 = vpop.f32.mrb[23].mxu1  ;;  %v1357_v55 = vadd.f32 %v2741_v46, %v4117_v43 }
 0x44f   :  { %v3476_v7 = vadd.f32 %v1250_v63, %v4108_v54  ;;  %v1356_v17 = vadd.f32 %v4117_v43, %v1319_v2 }
 0x450   :  { %v2375_v5 = vmul.f32 -1.442695, %v3475_v53 }
 0x451   :  { %v2377_v45 = vmul.f32 -1.442695, %v3476_v7 }
 0x452   :  { %3595 = vpow2.f32 %v2375_v5 }
 0x453   :  { %3597 = vpow2.f32 %v2376_v11 }
 0x454   :  { %3599 = vpow2.f32 %v2377_v45 }
 0x458   :  { %v3594_v39 = vpop.eup %3593 }
 0x459   :  { %v1336_v28 = vadd.f32 1.0, %v3594_v39 }
 0x45b   :  { %3601 = vrcp.f32 %v1336_v28 }
 0x45c   :  { %v3596_v32 = vpop.eup %3595 }
 0x45d   :  { %v1337_v35 = vadd.f32 1.0, %v3596_v32  ;;  %v3598_v25 = vpop.eup %3597 }
 0x45e   :  { %v3600_v42 = vpop.eup %3599  ;;  %v1350_v48 = vadd.f32 1.0, %v3598_v25 }
 0x45f   :  { %3603 = vrcp.f32 %v1337_v35  ;;  %v1351_v56 = vadd.f32 1.0, %v3600_v42 }
 0x460   :  { %3605 = vrcp.f32 %v1350_v48 }
 0x461   :  { %3607 = vrcp.f32 %v1351_v56 }
 0x465   :  { %v3602_v1 = vpop.eup %3601 }
 0x466   :  { %v1358_v37 = vmul.f32 %v3602_v1, %v1356_v17 }
 0x468   :  { %v1360_v59 = vadd.f32 %v1358_v37, %v4080_v6 }
 0x469   :  { %v3604_v21 = vpop.eup %3603 }
 0x46a   :  { %v1359_v58 = vmul.f32 %v3604_v21, %v1357_v55  ;;  %3609 = vtanh.f32 %v1360_v59  ;;  %v3606_v53 = vpop.eup %3605 }
 0x46b   :  { %v3608_v63 = vpop.eup %3607  ;;  %v1364_v5 = vsub.f32 1.0, %v3606_v53  ;;  %v1368_v11 = vmul.f32 %v3606_v53, %v4228_v50 }
 0x46c   :  { %v1361_v49 = vadd.f32 %v1359_v58, %v4077_v3  ;;  %v1365_v39 = vsub.f32 1.0, %v3608_v63  ;;  %v1369_v28 = vmul.f32 %v3608_v63, %v4235_v60 }
 0x46e   :  { %3611 = vtanh.f32 %v1361_v49 }
 0x474   :  { %v3610_v7 = vpop.eup %3609 }
 0x475   :  { %v1366_v2 = vmul.f32 %v3610_v7, %v1364_v5 }
 0x477   :  { %v4280_v45 = vadd.f32 %v1368_v11, %v1366_v2 }
 0x478   :  { %v3612_v46 = vpop.eup %3611 }
 0x479   :  { %1446 = vmatmul.mubr.f32.vlgmr.msra.gmra.mrb[16].mxu0 %v4280_v45  ;;  %2774 = vmatprep.mubr.f32.mxu1 %v4280_v45  ;;  %v1367_v6 = vmul.f32 %v3612_v46, %v1365_v39 }
 0x47a   :  { %1451 = vmatprep.mubr.f32.mxu0 %v3770_v0  ;;  %3248 = vmatpush1.bf16.msra.mxu0 %v3845_v14 }
 0x47b   :  { %v4287_v3 = vadd.f32 %v1369_v28, %v1367_v6  ;;  %3250 = vmatprep.subr.bf16.mxu0 %v3848_v16 }
 0x47d   :  { %1452 = vmatmul.mubr.f32.gmra.mrb[18].mxu0 %v4287_v3  ;;  %2775 = vmatmul.mubr.f32.vlgmr.msra.gmra.mrb[24].mxu1 %v4287_v3 }
 0x47e   :  { %3252 = vmatpush1.bf16.msra.mxu0 %v3856_v22  ;;  %3280 = vmatpush3.bf16.msra.mxu1 %v3884_v47 }
 0x47f   :  { %3254 = vmatprep.subr.bf16.mxu0 %v3859_v23  ;;  %3282 = vmatprep.subr.bf16.mxu1 %v3898_v57 }
 0x480   :  { %1650 = vmatprep.mubr.f32.mxu0 %v3770_v0 }
 0x482   :  { %3256 = vmatpush1.bf16.msra.mxu0 %v3867_v29  ;;  %3284 = vmatpush3.bf16.msra.mxu1 %v3898_v57 }
 0x483   :  { %3258 = vmatprep.subr.bf16.mxu0 %v3870_v30  ;;  %3286 = vmatprep.subr.bf16.mxu1 %v3915_v4 }
 0x486   :  { %3260 = vmatpush1.bf16.msra.mxu0 %v3878_v38  ;;  %3288 = vmatpush3.bf16.msra.mxu1 %v3915_v4 }
 0x487   :  { %3262 = vmatprep.subr.bf16.mxu0 %v3881_v40  ;;  %3290 = vmatprep.subr.bf16.mxu1 %v3932_v13 }
 0x48a   :  { %3264 = vmatpush1.bf16.msra.mxu0 %v3891_v51  ;;  %3292 = vmatpush3.bf16.msra.mxu1 %v3932_v13 }
 0x48b   :  { %3266 = vmatprep.subr.bf16.mxu0 %v3894_v52  ;;  %3294 = vmatprep.subr.bf16.mxu1 %v3945_v20 }
 0x48e   :  { %3268 = vmatpush1.bf16.msra.mxu0 %v3907_v61  ;;  %3296 = vmatpush3.bf16.msra.mxu1 %v3945_v20 }
 0x48f   :  { %3270 = vmatprep.subr.bf16.mxu0 %v3910_v62  ;;  %3298 = vmatprep.subr.bf16.mxu1 %v3961_v27 }
 0x492   :  { %3272 = vmatpush1.bf16.msra.mxu0 %v3924_v8  ;;  %3300 = vmatpush3.bf16.msra.mxu1 %v3961_v27 }
 0x493   :  { %3274 = vmatprep.subr.bf16.mxu0 %v3927_v9  ;;  %3302 = vmatprep.subr.bf16.mxu1 %v3976_v34 }
 0x496   :  { %3276 = vmatpush1.bf16.msra.mxu0 %v3941_v19  ;;  %3304 = vmatpush3.bf16.msra.mxu1 %v3976_v34 }
 0x497   :  { %3306 = vmatprep.subr.bf16.mxu1 %v3990_v41  ;;  %3310 = vmatprep.subr.bf16.mxu0 %v3843_v12 }
 0x49a   :  { %3308 = vmatpush3.bf16.msra.mxu1 %v3990_v41 }
 0x49b   :  { %3342 = vmatprep.subr.bf16.mxu1 %v3884_v47 }
 0x54c   :  { %v1447_v50 = vpop.f32.mrb[16].mxu0 }
 0x54d   :  { %v3477_v60 = vadd.f32 %v1447_v50, %v4106_v44  ;;  %v1449_v32 = vpop.f32.mrb[17].mxu0 }
 0x54e   :  { %v3478_v25 = vadd.f32 %v1449_v32, %v4108_v54 }
 0x54f   :  { %v2378_v35 = vmul.f32 -1.442695, %v3477_v60 }
 0x550   :  { %v1453_v42 = vpop.f32.mrb[18].mxu0  ;;  %v2776_v48 = vpop.f32.mrb[24].mxu1  ;;  %v2380_v59 = vmul.f32 -1.442695, %v3478_v25 }
 0x551   :  { %3613 = vpow2.f32 %v2378_v35  ;;  %v3479_v17 = vadd.f32 %v1453_v42, %v4106_v44  ;;  %v1455_v1 = vpop.f32.mrb[19].mxu0  ;;  %v1524_v56 = vpop.f32.mrb[25].mxu1  ;;  %v1562_v28 = vadd.f32 %v2776_v48, %v4117_v43 }
 0x552   :  { %v3480_v55 = vadd.f32 %v1455_v1, %v4108_v54  ;;  %v1561_v11 = vadd.f32 %v4117_v43, %v1524_v56 }
 0x553   :  { %v2379_v37 = vmul.f32 -1.442695, %v3479_v17 }
 0x554   :  { %v2381_v21 = vmul.f32 -1.442695, %v3480_v55 }
 0x555   :  { %3615 = vpow2.f32 %v2379_v37 }
 0x556   :  { %3617 = vpow2.f32 %v2380_v59 }
 0x557   :  { %3619 = vpow2.f32 %v2381_v21 }
 0x55b   :  { %v3614_v58 = vpop.eup %3613 }
 0x55c   :  { %v1541_v49 = vadd.f32 1.0, %v3614_v58 }
 0x55e   :  { %3621 = vrcp.f32 %v1541_v49 }
 0x55f   :  { %v3616_v53 = vpop.eup %3615 }
 0x560   :  { %v1542_v63 = vadd.f32 1.0, %v3616_v53  ;;  %v3618_v5 = vpop.eup %3617 }
 0x561   :  { %v3620_v7 = vpop.eup %3619  ;;  %v1555_v2 = vadd.f32 1.0, %v3618_v5 }
 0x562   :  { %3623 = vrcp.f32 %v1542_v63  ;;  %v1556_v46 = vadd.f32 1.0, %v3620_v7 }
 0x563   :  { %3625 = vrcp.f32 %v1555_v2 }
 0x564   :  { %3627 = vrcp.f32 %v1556_v46 }
 0x568   :  { %v3622_v39 = vpop.eup %3621 }
 0x569   :  { %v1563_v6 = vmul.f32 %v3622_v39, %v1561_v11 }
 0x56b   :  { %v1565_v50 = vadd.f32 %v1563_v6, %v4086_v15 }
 0x56c   :  { %v3624_v60 = vpop.eup %3623 }
 0x56d   :  { %v1564_v32 = vmul.f32 %v3624_v60, %v1562_v28  ;;  %3629 = vtanh.f32 %v1565_v50  ;;  %v3626_v25 = vpop.eup %3625 }
 0x56e   :  { %v3628_v42 = vpop.eup %3627  ;;  %v1569_v17 = vsub.f32 1.0, %v3626_v25  ;;  %v1573_v37 = vmul.f32 %v3626_v25, %v4280_v45 }
 0x56f   :  { %v1566_v35 = vadd.f32 %v1564_v32, %v4083_v10  ;;  %v1570_v59 = vsub.f32 1.0, %v3628_v42  ;;  %v1574_v21 = vmul.f32 %v3628_v42, %v4287_v3 }
 0x571   :  { %3631 = vtanh.f32 %v1566_v35 }
 0x577   :  { %v3630_v1 = vpop.eup %3629 }
 0x578   :  { %v1571_v56 = vmul.f32 %v3630_v1, %v1569_v17 }
 0x57a   :  { %v4332_v55 = vadd.f32 %v1573_v37, %v1571_v56 }
 0x57b   :  { %v3632_v48 = vpop.eup %3631 }
 0x57c   :  { %1651 = vmatmul.mubr.f32.vlgmr.msra.gmra.mrb[20].mxu0 %v4332_v55  ;;  %2809 = vmatprep.mubr.f32.mxu1 %v4332_v55  ;;  %v1572_v15 = vmul.f32 %v3632_v48, %v1570_v59 }
 0x57d   :  { %1656 = vmatprep.mubr.f32.mxu0 %v3770_v0  ;;  %3312 = vmatpush1.bf16.msra.mxu0 %v3845_v14 }
 0x57e   :  { %v4339_v10 = vadd.f32 %v1574_v21, %v1572_v15  ;;  %3314 = vmatprep.subr.bf16.mxu0 %v3848_v16 }
 0x580   :  { %1657 = vmatmul.mubr.f32.gmra.mrb[22].mxu0 %v4339_v10  ;;  %2810 = vmatmul.mubr.f32.vlgmr.msra.gmra.mrb[26].mxu1 %v4339_v10 }
 0x581   :  { %3316 = vmatpush1.bf16.msra.mxu0 %v3856_v22  ;;  %3344 = vmatpush3.bf16.msra.mxu1 %v3884_v47 }
 0x582   :  { %3318 = vmatprep.subr.bf16.mxu0 %v3859_v23  ;;  %3346 = vmatprep.subr.bf16.mxu1 %v3898_v57 }
 0x583   :  { %1855 = vmatprep.mubr.f32.mxu0 %v3770_v0 }
 0x585   :  { %3320 = vmatpush1.bf16.msra.mxu0 %v3867_v29  ;;  %3348 = vmatpush3.bf16.msra.mxu1 %v3898_v57 }
 0x586   :  { %3322 = vmatprep.subr.bf16.mxu0 %v3870_v30  ;;  %3350 = vmatprep.subr.bf16.mxu1 %v3915_v4 }
 0x589   :  { %3324 = vmatpush1.bf16.msra.mxu0 %v3878_v38  ;;  %3352 = vmatpush3.bf16.msra.mxu1 %v3915_v4 }
 0x58a   :  { %3326 = vmatprep.subr.bf16.mxu0 %v3881_v40  ;;  %3354 = vmatprep.subr.bf16.mxu1 %v3932_v13 }
 0x58d   :  { %3328 = vmatpush1.bf16.msra.mxu0 %v3891_v51  ;;  %3356 = vmatpush3.bf16.msra.mxu1 %v3932_v13 }
 0x58e   :  { %3330 = vmatprep.subr.bf16.mxu0 %v3894_v52  ;;  %3358 = vmatprep.subr.bf16.mxu1 %v3945_v20 }
 0x591   :  { %3332 = vmatpush1.bf16.msra.mxu0 %v3907_v61  ;;  %3360 = vmatpush3.bf16.msra.mxu1 %v3945_v20 }
 0x592   :  { %3334 = vmatprep.subr.bf16.mxu0 %v3910_v62  ;;  %3362 = vmatprep.subr.bf16.mxu1 %v3961_v27 }
 0x595   :  { %3336 = vmatpush1.bf16.msra.mxu0 %v3924_v8  ;;  %3364 = vmatpush3.bf16.msra.mxu1 %v3961_v27 }
 0x596   :  { %3338 = vmatprep.subr.bf16.mxu0 %v3927_v9  ;;  %3366 = vmatprep.subr.bf16.mxu1 %v3976_v34 }
 0x599   :  { %3340 = vmatpush1.bf16.msra.mxu0 %v3941_v19  ;;  %3368 = vmatpush3.bf16.msra.mxu1 %v3976_v34 }
 0x59a   :  { %3370 = vmatprep.subr.bf16.mxu1 %v3990_v41  ;;  %3374 = vmatprep.subr.bf16.mxu0 %v3843_v12 }
 0x59d   :  { %3372 = vmatpush3.bf16.msra.mxu1 %v3990_v41 }
 0x59e   :  { %3406 = vmatprep.subr.bf16.mxu1 %v3884_v47 }
 0x64f   :  { %v1652_v45 = vpop.f32.mrb[20].mxu0 }
 0x650   :  { %v3481_v3 = vadd.f32 %v1652_v45, %v4106_v44  ;;  %v1654_v58 = vpop.f32.mrb[21].mxu0 }
 0x651   :  { %v3482_v53 = vadd.f32 %v1654_v58, %v4108_v54 }
 0x652   :  { %v2382_v49 = vmul.f32 -1.442695, %v3481_v3 }
 0x653   :  { %v1658_v63 = vpop.f32.mrb[22].mxu0  ;;  %v2811_v5 = vpop.f32.mrb[26].mxu1  ;;  %v2384_v46 = vmul.f32 -1.442695, %v3482_v53 }
 0x654   :  { %3633 = vpow2.f32 %v2382_v49  ;;  %v3483_v7 = vadd.f32 %v1658_v63, %v4106_v44  ;;  %v1660_v2 = vpop.f32.mrb[23].mxu0  ;;  %v1729_v11 = vpop.f32.mrb[27].mxu1  ;;  %v1767_v59 = vadd.f32 %v2811_v5, %v4117_v43 }
 0x655   :  { %v3484_v12 = vadd.f32 %v1660_v2, %v4108_v54  ;;  %v1766_v17 = vadd.f32 %v4117_v43, %v1729_v11 }
 0x656   :  { %v2383_v39 = vmul.f32 -1.442695, %v3483_v7 }
 0x657   :  { %v2385_v6 = vmul.f32 -1.442695, %v3484_v12 }
 0x658   :  { %3635 = vpow2.f32 %v2383_v39 }
 0x659   :  { %3637 = vpow2.f32 %v2384_v46 }
 0x65a   :  { %3639 = vpow2.f32 %v2385_v6 }
 0x65e   :  { %v3634_v28 = vpop.eup %3633 }
 0x65f   :  { %v1746_v50 = vadd.f32 1.0, %v3634_v28 }
 0x661   :  { %3641 = vrcp.f32 %v1746_v50 }
 0x662   :  { %v3636_v60 = vpop.eup %3635 }
 0x663   :  { %v1747_v32 = vadd.f32 1.0, %v3636_v60  ;;  %v3638_v35 = vpop.eup %3637 }
 0x664   :  { %v3640_v25 = vpop.eup %3639  ;;  %v1760_v42 = vadd.f32 1.0, %v3638_v35 }
 0x665   :  { %3643 = vrcp.f32 %v1747_v32  ;;  %v1761_v56 = vadd.f32 1.0, %v3640_v25 }
 0x666   :  { %3645 = vrcp.f32 %v1760_v42 }
 0x667   :  { %3647 = vrcp.f32 %v1761_v56 }
 0x66b   :  { %v3642_v1 = vpop.eup %3641 }
 0x66c   :  { %v1768_v37 = vmul.f32 %v3642_v1, %v1766_v17 }
 0x66e   :  { %v1770_v48 = vadd.f32 %v1768_v37, %v4092_v24 }
 0x66f   :  { %v3644_v15 = vpop.eup %3643 }
 0x670   :  { %v1769_v21 = vmul.f32 %v3644_v15, %v1767_v59  ;;  %3649 = vtanh.f32 %v1770_v48  ;;  %v3646_v3 = vpop.eup %3645  ;;  %v2207_v48 = vld [vmem:[%s4528_s5] sm:$0xff]  ;;  %v2208_v15 = vld [vmem:[%s4528_s5 + $0x8] sm:$0xff] }
 0x671   :  { %v3648_v58 = vpop.eup %3647  ;;  %v1774_v49 = vsub.f32 1.0, %v3646_v3  ;;  %v1778_v7 = vmul.f32 %v3646_v3, %v4332_v55  ;;  %v2209_v3 = vld [vmem:[%s4528_s5 + $0x10] sm:$0xff] }
 0x672   :  { %v1771_v45 = vadd.f32 %v1769_v21, %v4089_v18  ;;  %v1775_v11 = vsub.f32 1.0, %v3648_v58  ;;  %v1779_v5 = vmul.f32 %v3648_v58, %v4339_v10  ;;  %v3438_v21 = vpack.c.bf16 %v2208_v15, %v2207_v48  ;;  %v2210_v58 = vld [vmem:[%s4528_s5 + $0x18] sm:$0xff] }
 0x674   :  { %3651 = vtanh.f32 %v1771_v45  ;;  %v3771_v45 = vmov 0.0|0.0  }
 0x67a   :  { %v3650_v53 = vpop.eup %3649 }
 0x67b   :  { %v1776_v63 = vmul.f32 %v3650_v53, %v1774_v49  ;;  %v3441_v49 = vpack.c.bf16 %v2210_v58, %v2209_v3  ;;  %v2211_v53 = vld [vmem:[%s4528_s5 + $0x20] sm:$0xff] }
 0x67d   :  { %v4384_v2 = vadd.f32 %v1778_v7, %v1776_v63  ;;  %v2212_v63 = vld [vmem:[%s4528_s5 + $0x28] sm:$0xff] }
 0x67e   :  { %v3652_v43 = vpop.eup %3651  ;;  %v3444_v7 = vpack.c.bf16 %v2212_v63, %v2211_v53 }
 0x67f   :  { %1856 = vmatmul.mubr.f32.vlgmr.msra.gmra.mrb[24].mxu0 %v4384_v2  ;;  %2844 = vmatprep.mubr.f32.mxu1 %v4384_v2  ;;  %v1777_v24 = vmul.f32 %v3652_v43, %v1775_v11  ;;  %v2214_v11 = vld [vmem:[%s4528_s5 + $0x38] sm:$0xff] }
 0x680   :  { %1861 = vmatprep.mubr.f32.mxu0 %v3770_v0  ;;  %3376 = vmatpush1.bf16.msra.mxu0 %v3845_v14 }
 0x681   :  { %v4391_v18 = vadd.f32 %v1779_v5, %v1777_v24  ;;  %3378 = vmatprep.subr.bf16.mxu0 %v3848_v16  ;;  %v2215_v24 = vld [vmem:[%s4528_s5 + $0x40] sm:$0xff]  ;;  %v2216_v5 = vld [vmem:[%s4528_s5 + $0x48] sm:$0xff] }
 0x683   :  { %1862 = vmatmul.mubr.f32.gmra.mrb[26].mxu0 %v4391_v18  ;;  %2845 = vmatmul.mubr.f32.vlgmr.msra.gmra.mrb[28].mxu1 %v4391_v18 }
 0x684   :  { %3380 = vmatpush1.bf16.msra.mxu0 %v3856_v22  ;;  %3408 = vmatpush3.bf16.msra.mxu1 %v3884_v47 }
 0x685   :  { %3382 = vmatprep.subr.bf16.mxu0 %v3859_v23  ;;  %3410 = vmatprep.subr.bf16.mxu1 %v3898_v57 }
 0x686   :  { %2060 = vmatprep.mubr.f32.mxu0 %v3770_v0 }
 0x688   :  { %3384 = vmatpush1.bf16.msra.mxu0 %v3867_v29  ;;  %3412 = vmatpush3.bf16.msra.mxu1 %v3898_v57 }
 0x689   :  { %3386 = vmatprep.subr.bf16.mxu0 %v3870_v30  ;;  %3414 = vmatprep.subr.bf16.mxu1 %v3915_v4 }
 0x68c   :  { %3388 = vmatpush1.bf16.msra.mxu0 %v3878_v38  ;;  %3416 = vmatpush3.bf16.msra.mxu1 %v3915_v4 }
 0x68d   :  { %3390 = vmatprep.subr.bf16.mxu0 %v3881_v40  ;;  %3418 = vmatprep.subr.bf16.mxu1 %v3932_v13 }
 0x690   :  { %3392 = vmatpush1.bf16.msra.mxu0 %v3891_v51  ;;  %3420 = vmatpush3.bf16.msra.mxu1 %v3932_v13 }
 0x691   :  { %3394 = vmatprep.subr.bf16.mxu0 %v3894_v52  ;;  %3422 = vmatprep.subr.bf16.mxu1 %v3945_v20 }
 0x694   :  { %3396 = vmatpush1.bf16.msra.mxu0 %v3907_v61  ;;  %3424 = vmatpush3.bf16.msra.mxu1 %v3945_v20 }
 0x695   :  { %3398 = vmatprep.subr.bf16.mxu0 %v3910_v62  ;;  %3426 = vmatprep.subr.bf16.mxu1 %v3961_v27 }
 0x698   :  { %3400 = vmatpush1.bf16.msra.mxu0 %v3924_v8  ;;  %3428 = vmatpush3.bf16.msra.mxu1 %v3961_v27 }
 0x699   :  { %3402 = vmatprep.subr.bf16.mxu0 %v3927_v9  ;;  %3430 = vmatprep.subr.bf16.mxu1 %v3976_v34 }
 0x69c   :  { %3404 = vmatpush1.bf16.msra.mxu0 %v3941_v19  ;;  %3432 = vmatpush3.bf16.msra.mxu1 %v3976_v34  ;;  %v4432_v34 = vld [vmem:[%s4527_s4] ss:$0 sm:$0xff] }
 0x69d   :  { %3434 = vmatprep.subr.bf16.mxu1 %v3990_v41 }
 0x6a0   :  { %3436 = vmatpush3.bf16.msra.mxu1 %v3990_v41 }
 0x6a1   :  { %3437 = vmatprep.subr.bf16.mxu1 %v3771_v45 }
 0x752   :  { %v1857_v14 = vpop.f32.mrb[24].mxu0 }
 0x753   :  { %v3485_v16 = vadd.f32 %v1857_v14, %v4106_v44  ;;  %v1859_v22 = vpop.f32.mrb[25].mxu0  ;;  %v2217_v14 = vld [vmem:[%s4528_s5 + $0x50] sm:$0xff] }
 0x754   :  { %v3486_v29 = vadd.f32 %v1859_v22, %v4108_v54 }
 0x755   :  { %v2386_v23 = vmul.f32 -1.442695, %v3485_v16  ;;  %v2218_v16 = vld [vmem:[%s4528_s5 + $0x58] sm:$0xff] }
 0x756   :  { %v1863_v30 = vpop.f32.mrb[26].mxu0  ;;  %v2846_v38 = vpop.f32.mrb[28].mxu1  ;;  %v2388_v61 = vmul.f32 -1.442695, %v3486_v29  ;;  %v3453_v22 = vpack.c.bf16 %v2218_v16, %v2217_v14 }
 0x757   :  { %3653 = vpow2.f32 %v2386_v23  ;;  %v3487_v40 = vadd.f32 %v1863_v30, %v4106_v44  ;;  %v1865_v47 = vpop.f32.mrb[27].mxu0  ;;  %v1934_v51 = vpop.f32.mrb[29].mxu1  ;;  %v1972_v12 = vadd.f32 %v4432_v34, %v2846_v38  ;;  %v2219_v23 = vld [vmem:[%s4528_s5 + $0x60] sm:$0xff]  ;;  %v2221_v30 = vld [vmem:[%s4528_s5 + $0x70] sm:$0xff]  ;;  %v2222_v38 = vld [vmem:[%s4528_s5 + $0x78] sm:$0xff] }
 0x758   :  { %v3488_v57 = vadd.f32 %v1865_v47, %v4108_v54  ;;  %v1971_v41 = vadd.f32 %v4432_v34, %v1934_v51 }
 0x759   :  { %v2387_v52 = vmul.f32 -1.442695, %v3487_v40  ;;  %v3459_v40 = vpack.c.bf16 %v2222_v38, %v2221_v30 }
 0x75a   :  { %v2389_v62 = vmul.f32 -1.442695, %v3488_v57 }
 0x75b   :  { %3655 = vpow2.f32 %v2387_v52 }
 0x75c   :  { %3657 = vpow2.f32 %v2388_v61 }
 0x75d   :  { %3659 = vpow2.f32 %v2389_v62 }
 0x761   :  { %v3654_v4 = vpop.eup %3653 }
 0x762   :  { %v1951_v8 = vadd.f32 1.0, %v3654_v4 }
 0x764   :  { %3661 = vrcp.f32 %v1951_v8 }
 0x765   :  { %v3656_v9 = vpop.eup %3655 }
 0x766   :  { %v1952_v13 = vadd.f32 1.0, %v3656_v9  ;;  %v3658_v19 = vpop.eup %3657 }
 0x767   :  { %v3660_v20 = vpop.eup %3659  ;;  %v1965_v27 = vadd.f32 1.0, %v3658_v19 }
 0x768   :  { %3663 = vrcp.f32 %v1952_v13  ;;  %v1966_v10 = vadd.f32 1.0, %v3660_v20 }
 0x769   :  { %3665 = vrcp.f32 %v1965_v27 }
 0x76a   :  { %3667 = vrcp.f32 %v1966_v10 }
 0x76e   :  { %v3662_v55 = vpop.eup %3661 }
 0x76f   :  { %v1973_v39 = vmul.f32 %v3662_v55, %v1971_v41 }
 0x771   :  { %v1975_v46 = vadd.f32 %v1973_v39, %v4098_v31 }
 0x772   :  { %v3664_v6 = vpop.eup %3663 }
 0x773   :  { %v1974_v28 = vmul.f32 %v3664_v6, %v1972_v12  ;;  %3669 = vtanh.f32 %v1975_v46  ;;  %v3666_v60 = vpop.eup %3665 }
 0x774   :  { %v3668_v32 = vpop.eup %3667  ;;  %v1979_v35 = vsub.f32 1.0, %v3666_v60  ;;  %v1983_v17 = vmul.f32 %v3666_v60, %v4384_v2  ;;  %v2213_v2 = vld [vmem:[%s4528_s5 + $0x30] sm:$0xff] }
 0x775   :  { %v1976_v50 = vadd.f32 %v1974_v28, %v4095_v26  ;;  %v1980_v56 = vsub.f32 1.0, %v3668_v32  ;;  %v1984_v59 = vmul.f32 %v3668_v32, %v4391_v18  ;;  %v3447_v43 = vpack.c.bf16 %v2214_v11, %v2213_v2 }
 0x776   :  { %v3450_v18 = vpack.c.bf16 %v2216_v5, %v2215_v24 }
 0x777   :  { %3671 = vtanh.f32 %v1976_v50 }
 0x77d   :  { %v3670_v25 = vpop.eup %3669 }
 0x77e   :  { %v1981_v42 = vmul.f32 %v3670_v25, %v1979_v35 }
 0x780   :  { %v4439_v1 = vadd.f32 %v1983_v17, %v1981_v42 }
 0x781   :  { %v3672_v37 = vpop.eup %3671 }
 0x782   :  { %2061 = vmatmul.mubr.f32.vlgmr.msra.gmra.mrb[28].mxu0 %v4439_v1  ;;  %2879 = vmatprep.mubr.f32.mxu1 %v4439_v1  ;;  %v1982_v31 = vmul.f32 %v3672_v37, %v1980_v56 }
 0x783   :  { %2066 = vmatprep.mubr.f32.mxu0 %v3770_v0 }
 0x784   :  { %v4445_v26 = vadd.f32 %v1984_v59, %v1982_v31 }
 0x786   :  { %2067 = vmatmul.mubr.f32.gmra.mrb[30].mxu0 %v4445_v26  ;;  %2880 = vmatmul.mubr.f32.vlgmr.msra.gmra.mrb[30].mxu1 %v4445_v26 }
 0x787   :  { %3439 = vmatpush3.bf16.msra.mxu1 %v3438_v21  ;;  %2914 = vmatprep.mubr.msk.f32.mxu1 %vm3772_vm1, %v3770_v0  ;;  %v2220_v0 = vld [vmem:[%s4528_s5 + $0x68] sm:$0xff] }
 0x788   :  { %3440 = vmatprep.subr.bf16.mxu1 %v3771_v45  ;;  %v3456_v29 = vpack.c.bf16 %v2220_v0, %v2219_v23 }
 0x78b   :  { %3442 = vmatpush3.bf16.msra.mxu1 %v3441_v49 }
 0x78c   :  { %3443 = vmatprep.subr.bf16.mxu1 %v3771_v45 }
 0x78f   :  { %3445 = vmatpush3.bf16.msra.mxu1 %v3444_v7 }
 0x790   :  { %3446 = vmatprep.subr.bf16.mxu1 %v3771_v45 }
 0x793   :  { %3448 = vmatpush3.bf16.msra.mxu1 %v3447_v43 }
 0x794   :  { %3449 = vmatprep.subr.bf16.mxu1 %v3771_v45 }
 0x797   :  { %3451 = vmatpush3.bf16.msra.mxu1 %v3450_v18 }
 0x798   :  { %3452 = vmatprep.subr.bf16.mxu1 %v3771_v45 }
 0x79b   :  { %3454 = vmatpush3.bf16.msra.mxu1 %v3453_v22 }
 0x79c   :  { %3455 = vmatprep.subr.bf16.mxu1 %v3771_v45 }
 0x79f   :  { %3457 = vmatpush3.bf16.msra.mxu1 %v3456_v29 }
 0x7a0   :  { %3458 = vmatprep.subr.bf16.mxu1 %v3771_v45 }
 0x7a3   :  { %3460 = vmatpush3.bf16.msra.mxu1 %v3459_v40 }
 0x855   :  { %v2062_v47 = vpop.f32.mrb[28].mxu0 }
 0x856   :  { %v3489_v51 = vadd.f32 %v2062_v47, %v4106_v44  ;;  %v2064_v52 = vpop.f32.mrb[29].mxu0 }
 0x857   :  { %v3490_v61 = vadd.f32 %v2064_v52, %v4108_v54 }
 0x858   :  { %v2390_v57 = vmul.f32 -1.442695, %v3489_v51 }
 0x859   :  { %v2068_v62 = vpop.f32.mrb[30].mxu0  ;;  %v2881_v4 = vpop.f32.mrb[30].mxu1  ;;  %v2392_v27 = vmul.f32 -1.442695, %v3490_v61 }
 0x85a   :  { %3673 = vpow2.f32 %v2390_v57  ;;  %v3491_v8 = vadd.f32 %v2068_v62, %v4106_v44  ;;  %v2070_v9 = vpop.f32.mrb[31].mxu0  ;;  %v2139_v13 = vpop.f32.mrb[31].mxu1  ;;  %v2177_v32 = vadd.f32 %v4432_v34, %v2881_v4 }
 0x85b   :  { %v3492_v20 = vadd.f32 %v2070_v9, %v4108_v54  ;;  %v2176_v44 = vadd.f32 %v4432_v34, %v2139_v13 }
 0x85c   :  { %v2391_v19 = vmul.f32 -1.442695, %v3491_v8 }
 0x85d   :  { %v2393_v41 = vmul.f32 -1.442695, %v3492_v20 }
 0x85e   :  { %3675 = vpow2.f32 %v2391_v19 }
 0x85f   :  { %3677 = vpow2.f32 %v2392_v27 }
 0x860   :  { %3679 = vpow2.f32 %v2393_v41 }
 0x864   :  { %v3674_v55 = vpop.eup %3673 }
 0x865   :  { %v2156_v10 = vadd.f32 1.0, %v3674_v55 }
 0x867   :  { %3681 = vrcp.f32 %v2156_v10 }
 0x868   :  { %v3676_v39 = vpop.eup %3675 }
 0x869   :  { %v2157_v12 = vadd.f32 1.0, %v3676_v39  ;;  %v3678_v46 = vpop.eup %3677 }
 0x86a   :  { %v3680_v6 = vpop.eup %3679  ;;  %v2170_v28 = vadd.f32 1.0, %v3678_v46 }
 0x86b   :  { %3683 = vrcp.f32 %v2157_v12  ;;  %v2171_v60 = vadd.f32 1.0, %v3680_v6 }
 0x86c   :  { %3685 = vrcp.f32 %v2170_v28 }
 0x86d   :  { %3687 = vrcp.f32 %v2171_v60 }
 0x871   :  { %v3682_v50 = vpop.eup %3681 }
 0x872   :  { %v2178_v54 = vmul.f32 %v3682_v50, %v2176_v44 }
 0x874   :  { %v2180_v35 = vadd.f32 %v2178_v54, %v4104_v36 }
 0x875   :  { %v3684_v25 = vpop.eup %3683 }
 0x876   :  { %v2179_v42 = vmul.f32 %v3684_v25, %v2177_v32  ;;  %3689 = vtanh.f32 %v2180_v35  ;;  %v3686_v56 = vpop.eup %3685 }
 0x877   :  { %v3688_v37 = vpop.eup %3687  ;;  %v2184_v31 = vsub.f32 1.0, %v3686_v56  ;;  %v2188_v48 = vmul.f32 %v3686_v56, %v4439_v1 }
 0x878   :  { %v2181_v17 = vadd.f32 %v2179_v42, %v4101_v33  ;;  %v2185_v21 = vsub.f32 1.0, %v3688_v37  ;;  %v2189_v34 = vmul.f32 %v3688_v37, %v4445_v26  ;;  %v2394_v26 = vld [vmem:[%s4529_s6] ss:$0 sm:$0xff] }
 0x87a   :  { %3691 = vtanh.f32 %v2181_v17 }
 0x880   :  { %v3690_v59 = vpop.eup %3689 }
 0x881   :  { %v2186_v15 = vmul.f32 %v3690_v59, %v2184_v31 }
 0x883   :  { %v2190_v45 = vadd.f32 %v2188_v48, %v2186_v15 }
 0x884   :  { %v3692_v3 = vpop.eup %3691 }
 0x885   :  { %v2187_v36 = vmul.f32 %v3692_v3, %v2185_v21  ;;  %v2192_v58 = vrot.slane %v2190_v45, 4 }
 0x887   :  { %v2191_v49 = vadd.f32 %v2189_v34, %v2187_v36  ;;  %v2193_v53 = vadd.f32 %v2192_v58, %v2190_v45 }
 0x889   :  { %v2194_v63 = vrot.slane %v2193_v53, 2  ;;  %v2198_v7 = vrot.slane %v2191_v49, 4 }
 0x88b   :  { %v2195_v33 = vadd.f32 %v2194_v63, %v2193_v53  ;;  %v2199_v2 = vadd.f32 %v2198_v7, %v2191_v49 }
 0x88d   :  { %v2196_v11 = vrot.slane %v2195_v33, 1  ;;  %v2200_v43 = vrot.slane %v2199_v2, 2 }
 0x88f   :  { %v2201_v24 = vadd.f32 %v2200_v43, %v2199_v2  ;;  %v2197_v5 = vadd.f32 %v2196_v11, %v2195_v33 }
 0x891   :  { %v2202_v18 = vrot.slane %v2201_v24, 1  ;;  %v2205_v14 = vmul.f32 0.125, %v2197_v5 }
 0x893   :  { %v2203_v1 = vadd.f32 %v2202_v18, %v2201_v24 }
 0x895   :  { %v2206_v16 = vmul.f32 0.125, %v2203_v1 }
 0x897   :  { %v2233_v22 = vsel %vm2232_vm2, %v2206_v16, %v2205_v14 }
 0x898   :  { %2915 = vmatmul.mubr.f32.vlgmr.msra.gmra.mrb[32].mxu1 %v2233_v22 }
 0x96b   :  { %v2301_v23 = vpop.f32.mrb[32].mxu1 }
 0x96c   :  { %v2302_v0 = vadd.f32 %v2394_v26, %v2301_v23  ;;  %v2916_v29 = vpop.f32.mrb[33].mxu1 }
 0x96e   :  { %2305 = vst [vmem:[#allocation8] sm:$0x3] %v2302_v0 }
 0x96f   :  { %3749 = shalt.err (!%p3746_p6)
}
 0x970   :  { %s3750_s22 = scalar_lea.hbm %s4530_s7, 32 }
 0x971   :  { %p3751_p7 = scmp.ne.s32.totalorder %s4530_s7, %s3750_s22  ;;  %p3754_p8 = scmp.lt.u32.totalorder %s3750_s22, %s4530_s7 }
 0x973   :  { %p3756_p9 = pnand %p3754_p8, %p3751_p7 }
 0x975   :  { %3759 = shalt.err (!%p3756_p9)
}
 0x976   :  { %2315 = dma.vmem_to_hbm [thread:$0]  %s2313_s18, 32, %s4530_s7, [#allocation5]  }
 0x977   :  { %3764 = dma.done.wait [#allocation5], 32  }
 0x978   :  { %3765 = vsyncadd [#allocation5], 4294967264 }
 0x979   :  { %2319 = vsyncpa [#allocation4], 1 }
 0x97a   :  { %2320 = vsyncpa [#allocation7], 1 }
 0x97b   :  { %2321 = vsyncpa [#allocation5], 1 }

</bundles_post_ra>
